<compile_context>
chip_gen: v7x
topology: tpu7x:2x2x1
jax: 0.10.0
libtpu: 0.0.40
codegen_flags: <defaults>
</compile_context>

<pallas_src>
import jax
import jax.numpy as jnp
from jax.experimental import pallas as pl
from jax.experimental.pallas import tpu as pltpu


# ----------------------------- Pallas kernels ------------------------------


def _conv_relu_pool_kernel(p00_ref, p01_ref, p10_ref, p11_ref,
                           w_ref, b_ref, o_ref):
    """Fused conv(im2col matmul) + bias + ReLU + 2x2/stride-2 max-pool for one
    batch sample.  Each p??_ref holds the patches for one of the four positions
    inside the pooling window, so the pool is an elementwise max of the four
    matmul results -- all VMEM resident, single HBM writeback of pooled data."""
    w = w_ref[...]          # (K, OC) bf16
    bias = b_ref[...]       # (1, OC) f32

    def branch(p_ref):
        acc = jnp.dot(p_ref[0], w, preferred_element_type=jnp.float32)
        return jnp.maximum(acc + bias, 0.0)   # bias + ReLU in f32

    pooled = jnp.maximum(jnp.maximum(branch(p00_ref), branch(p01_ref)),
                         jnp.maximum(branch(p10_ref), branch(p11_ref)))
    o_ref[0] = pooled.astype(o_ref.dtype)


def _mlp_kernel(x_ref, w1_ref, b1_ref, w2_ref, b2_ref, w3_ref, b3_ref, o_ref):
    """Fused fc1 -> ReLU -> fc2 -> ReLU -> fc3 with all weights in VMEM."""
    h = jnp.dot(x_ref[...], w1_ref[...], preferred_element_type=jnp.float32)
    h = jnp.maximum(h + b1_ref[...], 0.0)
    h = jnp.dot(h.astype(jnp.bfloat16), w2_ref[...],
                preferred_element_type=jnp.float32)
    h = jnp.maximum(h + b2_ref[...], 0.0)
    h = jnp.dot(h.astype(jnp.bfloat16), w3_ref[...],
                preferred_element_type=jnp.float32)
    o_ref[...] = (h + b3_ref[...]).astype(o_ref.dtype)


# ----------------------------- Pallas wrappers ------------------------------


def _im2col_pooled(x, kh, kw):
    """x: NHWC (B,H,W,C).  Returns 4 patch matrices, one per 2x2-pool offset,
    each (B, PH*PW, kh*kw*C) with columns ordered (di, dj, c)."""
    B, H, W, C = x.shape
    OH, OW = H - kh + 1, W - kw + 1   # conv output
    PH, PW = OH // 2, OW // 2         # pooled output
    outs = []
    for pi in (0, 1):
        for pj in (0, 1):
            cols = []
            for di in range(kh):
                for dj in range(kw):
                    r0, c0 = pi + di, pj + dj
                    cols.append(x[:, r0:r0 + 2 * PH:2, c0:c0 + 2 * PW:2, :])
            p = jnp.stack(cols, axis=3)                 # (B, PH, PW, kh*kw, C)
            outs.append(p.reshape(B, PH * PW, kh * kw * C))
    return outs, PH, PW


def conv_relu_pool(x_nhwc, w_mat, bias, kh=5, kw=5):
    """Fused conv+bias+ReLU+maxpool2x2.  x: NHWC, w_mat: (kh*kw*C, OC) bf16."""
    B = x_nhwc.shape[0]
    K, OC = w_mat.shape
    patches, PH, PW = _im2col_pooled(x_nhwc.astype(jnp.bfloat16), kh, kw)
    M = PH * PW

    patch_spec = pl.BlockSpec((1, M, K), lambda b: (b, 0, 0))
    out = pl.pallas_call(
        _conv_relu_pool_kernel,
        out_shape=jax.ShapeDtypeStruct((B, M, OC), jnp.bfloat16),
        grid=(B,),
        in_specs=[patch_spec] * 4 + [
            pl.BlockSpec((K, OC), lambda b: (0, 0)),   # weights (resident)
            pl.BlockSpec((1, OC), lambda b: (0, 0)),   # bias (resident)
        ],
        out_specs=pl.BlockSpec((1, M, OC), lambda b: (b, 0, 0)),
        compiler_params=pltpu.CompilerParams(
            dimension_semantics=("parallel",)),        # batch across TCs (v7x)
    )(*patches, w_mat, bias)
    return out.reshape(B, PH, PW, OC)


def mlp_head(x, w1, b1, w2, b2, w3, b3):
    """Fused fc1/relu/fc2/relu/fc3.  x: (B, 256) bf16."""
    B = x.shape[0]
    vm = pl.BlockSpec(memory_space=pltpu.MemorySpace.VMEM)
    return pl.pallas_call(
        _mlp_kernel,
        out_shape=jax.ShapeDtypeStruct((B, w3.shape[1]), jnp.float32),
        in_specs=[vm] * 7,
        out_specs=vm,
    )(x, w1, b1, w2, b2, w3, b3)


# ------------------------------- model glue --------------------------------


def init_params(key):
    """Deterministic PyTorch-default-style uniform init (PyTorch layouts)."""
    def uniform(k, shape, fan_in):
        bound = 1.0 / jnp.sqrt(jnp.float32(fan_in))
        return jax.random.uniform(k, shape, jnp.float32, -bound, bound)

    ks = jax.random.split(key, 10)
    return {
        "conv1_w": uniform(ks[0], (6, 1, 5, 5), 1 * 5 * 5),
        "conv1_b": uniform(ks[1], (6,), 1 * 5 * 5),
        "conv2_w": uniform(ks[2], (16, 6, 5, 5), 6 * 5 * 5),
        "conv2_b": uniform(ks[3], (16,), 6 * 5 * 5),
        "fc1_w": uniform(ks[4], (120, 256), 256),
        "fc1_b": uniform(ks[5], (120,), 256),
        "fc2_w": uniform(ks[6], (84, 120), 120),
        "fc2_b": uniform(ks[7], (84,), 120),
        "fc3_w": uniform(ks[8], (10, 84), 84),
        "fc3_b": uniform(ks[9], (10,), 84),
    }


def prepare_params(params):
    """One-time conversion of PyTorch-layout params into kernel-ready
    constants: bf16 matmul operands, f32 (1, N) biases, conv weights as
    (KH*KW*IC, OC) with (di, dj, c) row order matching the im2col columns, and
    fc1's input dim permuted from NCHW view(-1, 256) order to NHWC order so no
    runtime activation transpose is needed."""
    def conv_w(w):  # (OC, IC, KH, KW) -> (KH*KW*IC, OC)
        oc = w.shape[0]
        return jnp.transpose(w, (2, 3, 1, 0)).reshape(-1, oc).astype(jnp.bfloat16)

    w1 = params["fc1_w"].T.reshape(16, 4, 4, 120)            # [c, h, w, :]
    w1 = jnp.transpose(w1, (1, 2, 0, 3)).reshape(256, 120)   # rows = h*64+w*16+c

    return {
        "conv1_w": conv_w(params["conv1_w"]),
        "conv1_b": params["conv1_b"].reshape(1, -1).astype(jnp.float32),
        "conv2_w": conv_w(params["conv2_w"]),
        "conv2_b": params["conv2_b"].reshape(1, -1).astype(jnp.float32),
        "fc1_w": w1.astype(jnp.bfloat16),
        "fc1_b": params["fc1_b"].reshape(1, -1).astype(jnp.float32),
        "fc2_w": params["fc2_w"].T.astype(jnp.bfloat16),
        "fc2_b": params["fc2_b"].reshape(1, -1).astype(jnp.float32),
        "fc3_w": params["fc3_w"].T.astype(jnp.bfloat16),
        "fc3_b": params["fc3_b"].reshape(1, -1).astype(jnp.float32),
    }


def simple_cnn_forward(x_nchw, kp):
    B = x_nchw.shape[0]
    x = jnp.transpose(x_nchw, (0, 2, 3, 1))                   # NCHW -> NHWC

    # conv1(1->6,5x5)+ReLU+pool and conv2(6->16,5x5)+ReLU+pool: one fused
    # Pallas kernel launch each, bf16 activations between stages.
    y = conv_relu_pool(x, kp["conv1_w"], kp["conv1_b"])       # (B, 12, 12, 6)
    y = conv_relu_pool(y, kp["conv2_w"], kp["conv2_b"])       # (B, 4, 4, 16)

    # NHWC flatten; fc1_w rows were pre-permuted to match view(-1, 16*4*4).
    y = y.reshape(B, 4 * 4 * 16)

    # fc1 -> relu -> fc2 -> relu -> fc3, fused into one kernel.
    return mlp_head(y, kp["fc1_w"], kp["fc1_b"], kp["fc2_w"], kp["fc2_b"],
                    kp["fc3_w"], kp["fc3_b"])                 # (B, 10) f32


if __name__ == "__main__":
    key = jax.random.PRNGKey(0)
    k_x, k_p = jax.random.split(key)

    # Input: batch=2, 1 channel, 28x28 (fc1 = 16*4*4 implies 28x28 input).
    x = jax.random.normal(k_x, (2, 1, 28, 28), jnp.float32)
    params = init_params(k_p)
    kparams = prepare_params(params)   # weights prepped once, outside the jit

    fwd = jax.jit(simple_cnn_forward)
    out = jax.block_until_ready(fwd(x, kparams))
    assert out.shape == (2, 10) and out.dtype == jnp.float32
    print("KERNEL_OK")
</pallas_src>

<mosaic_0001>
module attributes {stable_mosaic.version = 11 : i64} {
  func.func @_conv_relu_pool_kernel(%arg0: i32, %arg1: memref<1x144x25xbf16, #tpu.memory_space<vmem>>, %arg2: memref<1x144x25xbf16, #tpu.memory_space<vmem>>, %arg3: memref<1x144x25xbf16, #tpu.memory_space<vmem>>, %arg4: memref<1x144x25xbf16, #tpu.memory_space<vmem>>, %arg5: memref<25x6xbf16, #tpu.memory_space<vmem>>, %arg6: memref<1x6xf32, #tpu.memory_space<vmem>>, %arg7: memref<1x144x6xbf16, #tpu.memory_space<vmem>>) attributes {dimension_semantics = [#tpu.dimension_semantics<parallel>], iteration_bounds = array<i64: 2>, scalar_prefetch = 0 : i64, scratch_operands = 0 : i64, tpu.core_type = #tpu.core_type<tc>, window_params = [{transform_indices = @transform_0, window_bounds = array<i64: 1, 144, 25>}, {transform_indices = @transform_1, window_bounds = array<i64: 1, 144, 25>}, {transform_indices = @transform_2, window_bounds = array<i64: 1, 144, 25>}, {transform_indices = @transform_3, window_bounds = array<i64: 1, 144, 25>}, {pipeline_mode = #tpu.pipeline_mode<synchronous>, transform_indices = @transform_4, window_bounds = array<i64: 25, 6>}, {pipeline_mode = #tpu.pipeline_mode<synchronous>, transform_indices = @transform_5, window_bounds = array<i64: 1, 6>}, {transform_indices = @transform_6, window_bounds = array<i64: 1, 144, 6>}]} {
    %c0 = arith.constant 0 : index
    %c0_0 = arith.constant 0 : index
    %0 = vector.load %arg5[%c0, %c0_0] : memref<25x6xbf16, #tpu.memory_space<vmem>>, vector<25x6xbf16>
    %c0_1 = arith.constant 0 : index
    %c0_2 = arith.constant 0 : index
    %1 = vector.load %arg6[%c0_1, %c0_2] : memref<1x6xf32, #tpu.memory_space<vmem>>, vector<1x6xf32>
    %c0_3 = arith.constant 0 : index
    %c0_4 = arith.constant 0 : index
    %c0_5 = arith.constant 0 : index
    %2 = vector.load %arg1[%c0_3, %c0_4, %c0_5] : memref<1x144x25xbf16, #tpu.memory_space<vmem>>, vector<1x144x25xbf16>
    %3 = vector.shape_cast %2 : vector<1x144x25xbf16> to vector<144x25xbf16>
    %cst = arith.constant dense<0.000000e+00> : vector<144x6xf32>
    %4 = tpu.matmul %3, %0, %cst {dimension_numbers = #tpu.dot_dimension_numbers<[1], [0], [0], [1], [0, 0, 1, 1], [], []>} : vector<144x25xbf16>, vector<25x6xbf16>, vector<144x6xf32> -> vector<144x6xf32>
    %5 = vector.broadcast %1 : vector<1x6xf32> to vector<144x6xf32>
    %6 = arith.addf %4, %5 : vector<144x6xf32>
    %cst_6 = arith.constant 0.000000e+00 : f32
    %7 = vector.broadcast %cst_6 : f32 to vector<144x6xf32>
    %8 = arith.maximumf %6, %7 : vector<144x6xf32>
    %c0_7 = arith.constant 0 : index
    %c0_8 = arith.constant 0 : index
    %c0_9 = arith.constant 0 : index
    %9 = vector.load %arg2[%c0_7, %c0_8, %c0_9] : memref<1x144x25xbf16, #tpu.memory_space<vmem>>, vector<1x144x25xbf16>
    %10 = vector.shape_cast %9 : vector<1x144x25xbf16> to vector<144x25xbf16>
    %cst_10 = arith.constant dense<0.000000e+00> : vector<144x6xf32>
    %11 = tpu.matmul %10, %0, %cst_10 {dimension_numbers = #tpu.dot_dimension_numbers<[1], [0], [0], [1], [0, 0, 1, 1], [], []>} : vector<144x25xbf16>, vector<25x6xbf16>, vector<144x6xf32> -> vector<144x6xf32>
    %12 = vector.broadcast %1 : vector<1x6xf32> to vector<144x6xf32>
    %13 = arith.addf %11, %12 : vector<144x6xf32>
    %cst_11 = arith.constant 0.000000e+00 : f32
    %14 = vector.broadcast %cst_11 : f32 to vector<144x6xf32>
    %15 = arith.maximumf %13, %14 : vector<144x6xf32>
    %16 = arith.maximumf %8, %15 : vector<144x6xf32>
    %c0_12 = arith.constant 0 : index
    %c0_13 = arith.constant 0 : index
    %c0_14 = arith.constant 0 : index
    %17 = vector.load %arg3[%c0_12, %c0_13, %c0_14] : memref<1x144x25xbf16, #tpu.memory_space<vmem>>, vector<1x144x25xbf16>
    %18 = vector.shape_cast %17 : vector<1x144x25xbf16> to vector<144x25xbf16>
    %cst_15 = arith.constant dense<0.000000e+00> : vector<144x6xf32>
    %19 = tpu.matmul %18, %0, %cst_15 {dimension_numbers = #tpu.dot_dimension_numbers<[1], [0], [0], [1], [0, 0, 1, 1], [], []>} : vector<144x25xbf16>, vector<25x6xbf16>, vector<144x6xf32> -> vector<144x6xf32>
    %20 = vector.broadcast %1 : vector<1x6xf32> to vector<144x6xf32>
    %21 = arith.addf %19, %20 : vector<144x6xf32>
    %cst_16 = arith.constant 0.000000e+00 : f32
    %22 = vector.broadcast %cst_16 : f32 to vector<144x6xf32>
    %23 = arith.maximumf %21, %22 : vector<144x6xf32>
    %c0_17 = arith.constant 0 : index
    %c0_18 = arith.constant 0 : index
    %c0_19 = arith.constant 0 : index
    %24 = vector.load %arg4[%c0_17, %c0_18, %c0_19] : memref<1x144x25xbf16, #tpu.memory_space<vmem>>, vector<1x144x25xbf16>
    %25 = vector.shape_cast %24 : vector<1x144x25xbf16> to vector<144x25xbf16>
    %cst_20 = arith.constant dense<0.000000e+00> : vector<144x6xf32>
    %26 = tpu.matmul %25, %0, %cst_20 {dimension_numbers = #tpu.dot_dimension_numbers<[1], [0], [0], [1], [0, 0, 1, 1], [], []>} : vector<144x25xbf16>, vector<25x6xbf16>, vector<144x6xf32> -> vector<144x6xf32>
    %27 = vector.broadcast %1 : vector<1x6xf32> to vector<144x6xf32>
    %28 = arith.addf %26, %27 : vector<144x6xf32>
    %cst_21 = arith.constant 0.000000e+00 : f32
    %29 = vector.broadcast %cst_21 : f32 to vector<144x6xf32>
    %30 = arith.maximumf %28, %29 : vector<144x6xf32>
    %31 = arith.maximumf %23, %30 : vector<144x6xf32>
    %32 = arith.maximumf %16, %31 : vector<144x6xf32>
    %33 = arith.truncf %32 : vector<144x6xf32> to vector<144x6xbf16>
    %c0_22 = arith.constant 0 : index
    %c0_23 = arith.constant 0 : index
    %c0_24 = arith.constant 0 : index
    %34 = vector.load %arg7[%c0_22, %c0_23, %c0_24] : memref<1x144x6xbf16, #tpu.memory_space<vmem>>, vector<1x144x6xbf16>
    %35 = vector.shape_cast %34 : vector<1x144x6xbf16> to vector<144x6xbf16>
    %36 = vector.shape_cast %33 : vector<144x6xbf16> to vector<1x144x6xbf16>
    tpu.vector_store %arg7[%c0_22, %c0_23, %c0_24], %36 {strides = array<i32>} : memref<1x144x6xbf16, #tpu.memory_space<vmem>>, vector<1x144x6xbf16>,
    return
  }
  func.func @transform_0(%arg0: i32) -> (i32, i32, i32) {
    %c0_i32 = arith.constant 0 : i32
    %c0_i32_0 = arith.constant 0 : i32
    %c0_i32_1 = arith.constant 0 : i32
    return %arg0, %c0_i32, %c0_i32_0 : i32, i32, i32
  }
  func.func @transform_1(%arg0: i32) -> (i32, i32, i32) {
    %c0_i32 = arith.constant 0 : i32
    %c0_i32_0 = arith.constant 0 : i32
    %c0_i32_1 = arith.constant 0 : i32
    return %arg0, %c0_i32, %c0_i32_0 : i32, i32, i32
  }
  func.func @transform_2(%arg0: i32) -> (i32, i32, i32) {
    %c0_i32 = arith.constant 0 : i32
    %c0_i32_0 = arith.constant 0 : i32
    %c0_i32_1 = arith.constant 0 : i32
    return %arg0, %c0_i32, %c0_i32_0 : i32, i32, i32
  }
  func.func @transform_3(%arg0: i32) -> (i32, i32, i32) {
    %c0_i32 = arith.constant 0 : i32
    %c0_i32_0 = arith.constant 0 : i32
    %c0_i32_1 = arith.constant 0 : i32
    return %arg0, %c0_i32, %c0_i32_0 : i32, i32, i32
  }
  func.func @transform_4(%arg0: i32) -> (i32, i32) {
    %c0_i32 = arith.constant 0 : i32
    %c0_i32_0 = arith.constant 0 : i32
    %c0_i32_1 = arith.constant 0 : i32
    return %c0_i32, %c0_i32_0 : i32, i32
  }
  func.func @transform_5(%arg0: i32) -> (i32, i32) {
    %c0_i32 = arith.constant 0 : i32
    %c0_i32_0 = arith.constant 0 : i32
    %c0_i32_1 = arith.constant 0 : i32
    return %c0_i32, %c0_i32_0 : i32, i32
  }
  func.func @transform_6(%arg0: i32) -> (i32, i32, i32) {
    %c0_i32 = arith.constant 0 : i32
    %c0_i32_0 = arith.constant 0 : i32
    %c0_i32_1 = arith.constant 0 : i32
    return %arg0, %c0_i32, %c0_i32_0 : i32, i32, i32
  }
}

module attributes {stable_mosaic.version = 11 : i64} {
  func.func @_conv_relu_pool_kernel(%arg0: i32, %arg1: memref<1x16x150xbf16, #tpu.memory_space<vmem>>, %arg2: memref<1x16x150xbf16, #tpu.memory_space<vmem>>, %arg3: memref<1x16x150xbf16, #tpu.memory_space<vmem>>, %arg4: memref<1x16x150xbf16, #tpu.memory_space<vmem>>, %arg5: memref<150x16xbf16, #tpu.memory_space<vmem>>, %arg6: memref<1x16xf32, #tpu.memory_space<vmem>>, %arg7: memref<1x16x16xbf16, #tpu.memory_space<vmem>>) attributes {dimension_semantics = [#tpu.dimension_semantics<parallel>], iteration_bounds = array<i64: 2>, scalar_prefetch = 0 : i64, scratch_operands = 0 : i64, tpu.core_type = #tpu.core_type<tc>, window_params = [{transform_indices = @transform_0, window_bounds = array<i64: 1, 16, 150>}, {transform_indices = @transform_1, window_bounds = array<i64: 1, 16, 150>}, {transform_indices = @transform_2, window_bounds = array<i64: 1, 16, 150>}, {transform_indices = @transform_3, window_bounds = array<i64: 1, 16, 150>}, {pipeline_mode = #tpu.pipeline_mode<synchronous>, transform_indices = @transform_4, window_bounds = array<i64: 150, 16>}, {pipeline_mode = #tpu.pipeline_mode<synchronous>, transform_indices = @transform_5, window_bounds = array<i64: 1, 16>}, {transform_indices = @transform_6, window_bounds = array<i64: 1, 16, 16>}]} {
    %c0 = arith.constant 0 : index
    %c0_0 = arith.constant 0 : index
    %0 = vector.load %arg5[%c0, %c0_0] : memref<150x16xbf16, #tpu.memory_space<vmem>>, vector<150x16xbf16>
    %c0_1 = arith.constant 0 : index
    %c0_2 = arith.constant 0 : index
    %1 = vector.load %arg6[%c0_1, %c0_2] : memref<1x16xf32, #tpu.memory_space<vmem>>, vector<1x16xf32>
    %c0_3 = arith.constant 0 : index
    %c0_4 = arith.constant 0 : index
    %c0_5 = arith.constant 0 : index
    %2 = vector.load %arg1[%c0_3, %c0_4, %c0_5] : memref<1x16x150xbf16, #tpu.memory_space<vmem>>, vector<1x16x150xbf16>
    %3 = vector.shape_cast %2 : vector<1x16x150xbf16> to vector<16x150xbf16>
    %cst = arith.constant dense<0.000000e+00> : vector<16x16xf32>
    %4 = tpu.matmul %3, %0, %cst {dimension_numbers = #tpu.dot_dimension_numbers<[1], [0], [0], [1], [0, 0, 1, 1], [], []>} : vector<16x150xbf16>, vector<150x16xbf16>, vector<16x16xf32> -> vector<16x16xf32>
    %5 = vector.broadcast %1 : vector<1x16xf32> to vector<16x16xf32>
    %6 = arith.addf %4, %5 : vector<16x16xf32>
    %cst_6 = arith.constant 0.000000e+00 : f32
    %7 = vector.broadcast %cst_6 : f32 to vector<16x16xf32>
    %8 = arith.maximumf %6, %7 : vector<16x16xf32>
    %c0_7 = arith.constant 0 : index
    %c0_8 = arith.constant 0 : index
    %c0_9 = arith.constant 0 : index
    %9 = vector.load %arg2[%c0_7, %c0_8, %c0_9] : memref<1x16x150xbf16, #tpu.memory_space<vmem>>, vector<1x16x150xbf16>
    %10 = vector.shape_cast %9 : vector<1x16x150xbf16> to vector<16x150xbf16>
    %cst_10 = arith.constant dense<0.000000e+00> : vector<16x16xf32>
    %11 = tpu.matmul %10, %0, %cst_10 {dimension_numbers = #tpu.dot_dimension_numbers<[1], [0], [0], [1], [0, 0, 1, 1], [], []>} : vector<16x150xbf16>, vector<150x16xbf16>, vector<16x16xf32> -> vector<16x16xf32>
    %12 = vector.broadcast %1 : vector<1x16xf32> to vector<16x16xf32>
    %13 = arith.addf %11, %12 : vector<16x16xf32>
    %cst_11 = arith.constant 0.000000e+00 : f32
    %14 = vector.broadcast %cst_11 : f32 to vector<16x16xf32>
    %15 = arith.maximumf %13, %14 : vector<16x16xf32>
    %16 = arith.maximumf %8, %15 : vector<16x16xf32>
    %c0_12 = arith.constant 0 : index
    %c0_13 = arith.constant 0 : index
    %c0_14 = arith.constant 0 : index
    %17 = vector.load %arg3[%c0_12, %c0_13, %c0_14] : memref<1x16x150xbf16, #tpu.memory_space<vmem>>, vector<1x16x150xbf16>
    %18 = vector.shape_cast %17 : vector<1x16x150xbf16> to vector<16x150xbf16>
    %cst_15 = arith.constant dense<0.000000e+00> : vector<16x16xf32>
    %19 = tpu.matmul %18, %0, %cst_15 {dimension_numbers = #tpu.dot_dimension_numbers<[1], [0], [0], [1], [0, 0, 1, 1], [], []>} : vector<16x150xbf16>, vector<150x16xbf16>, vector<16x16xf32> -> vector<16x16xf32>
    %20 = vector.broadcast %1 : vector<1x16xf32> to vector<16x16xf32>
    %21 = arith.addf %19, %20 : vector<16x16xf32>
    %cst_16 = arith.constant 0.000000e+00 : f32
    %22 = vector.broadcast %cst_16 : f32 to vector<16x16xf32>
    %23 = arith.maximumf %21, %22 : vector<16x16xf32>
    %c0_17 = arith.constant 0 : index
    %c0_18 = arith.constant 0 : index
    %c0_19 = arith.constant 0 : index
    %24 = vector.load %arg4[%c0_17, %c0_18, %c0_19] : memref<1x16x150xbf16, #tpu.memory_space<vmem>>, vector<1x16x150xbf16>
    %25 = vector.shape_cast %24 : vector<1x16x150xbf16> to vector<16x150xbf16>
    %cst_20 = arith.constant dense<0.000000e+00> : vector<16x16xf32>
    %26 = tpu.matmul %25, %0, %cst_20 {dimension_numbers = #tpu.dot_dimension_numbers<[1], [0], [0], [1], [0, 0, 1, 1], [], []>} : vector<16x150xbf16>, vector<150x16xbf16>, vector<16x16xf32> -> vector<16x16xf32>
    %27 = vector.broadcast %1 : vector<1x16xf32> to vector<16x16xf32>
    %28 = arith.addf %26, %27 : vector<16x16xf32>
    %cst_21 = arith.constant 0.000000e+00 : f32
    %29 = vector.broadcast %cst_21 : f32 to vector<16x16xf32>
    %30 = arith.maximumf %28, %29 : vector<16x16xf32>
    %31 = arith.maximumf %23, %30 : vector<16x16xf32>
    %32 = arith.maximumf %16, %31 : vector<16x16xf32>
    %33 = arith.truncf %32 : vector<16x16xf32> to vector<16x16xbf16>
    %c0_22 = arith.constant 0 : index
    %c0_23 = arith.constant 0 : index
    %c0_24 = arith.constant 0 : index
    %34 = vector.load %arg7[%c0_22, %c0_23, %c0_24] : memref<1x16x16xbf16, #tpu.memory_space<vmem>>, vector<1x16x16xbf16>
    %35 = vector.shape_cast %34 : vector<1x16x16xbf16> to vector<16x16xbf16>
    %36 = vector.shape_cast %33 : vector<16x16xbf16> to vector<1x16x16xbf16>
    tpu.vector_store %arg7[%c0_22, %c0_23, %c0_24], %36 {strides = array<i32>} : memref<1x16x16xbf16, #tpu.memory_space<vmem>>, vector<1x16x16xbf16>,
    return
  }
  func.func @transform_0(%arg0: i32) -> (i32, i32, i32) {
    %c0_i32 = arith.constant 0 : i32
    %c0_i32_0 = arith.constant 0 : i32
    %c0_i32_1 = arith.constant 0 : i32
    return %arg0, %c0_i32, %c0_i32_0 : i32, i32, i32
  }
  func.func @transform_1(%arg0: i32) -> (i32, i32, i32) {
    %c0_i32 = arith.constant 0 : i32
    %c0_i32_0 = arith.constant 0 : i32
    %c0_i32_1 = arith.constant 0 : i32
    return %arg0, %c0_i32, %c0_i32_0 : i32, i32, i32
  }
  func.func @transform_2(%arg0: i32) -> (i32, i32, i32) {
    %c0_i32 = arith.constant 0 : i32
    %c0_i32_0 = arith.constant 0 : i32
    %c0_i32_1 = arith.constant 0 : i32
    return %arg0, %c0_i32, %c0_i32_0 : i32, i32, i32
  }
  func.func @transform_3(%arg0: i32) -> (i32, i32, i32) {
    %c0_i32 = arith.constant 0 : i32
    %c0_i32_0 = arith.constant 0 : i32
    %c0_i32_1 = arith.constant 0 : i32
    return %arg0, %c0_i32, %c0_i32_0 : i32, i32, i32
  }
  func.func @transform_4(%arg0: i32) -> (i32, i32) {
    %c0_i32 = arith.constant 0 : i32
    %c0_i32_0 = arith.constant 0 : i32
    %c0_i32_1 = arith.constant 0 : i32
    return %c0_i32, %c0_i32_0 : i32, i32
  }
  func.func @transform_5(%arg0: i32) -> (i32, i32) {
    %c0_i32 = arith.constant 0 : i32
    %c0_i32_0 = arith.constant 0 : i32
    %c0_i32_1 = arith.constant 0 : i32
    return %c0_i32, %c0_i32_0 : i32, i32
  }
  func.func @transform_6(%arg0: i32) -> (i32, i32, i32) {
    %c0_i32 = arith.constant 0 : i32
    %c0_i32_0 = arith.constant 0 : i32
    %c0_i32_1 = arith.constant 0 : i32
    return %arg0, %c0_i32, %c0_i32_0 : i32, i32, i32
  }
}

module attributes {stable_mosaic.version = 11 : i64} {
  func.func @_mlp_kernel(%arg0: memref<2x256xbf16, #tpu.memory_space<vmem>>, %arg1: memref<256x120xbf16, #tpu.memory_space<vmem>>, %arg2: memref<1x120xf32, #tpu.memory_space<vmem>>, %arg3: memref<120x84xbf16, #tpu.memory_space<vmem>>, %arg4: memref<1x84xf32, #tpu.memory_space<vmem>>, %arg5: memref<84x10xbf16, #tpu.memory_space<vmem>>, %arg6: memref<1x10xf32, #tpu.memory_space<vmem>>, %arg7: memref<2x10xf32, #tpu.memory_space<vmem>>) attributes {dimension_semantics = [], scalar_prefetch = 0 : i64, scratch_operands = 0 : i64, tpu.core_type = #tpu.core_type<tc>} {
    %c0 = arith.constant 0 : index
    %c0_0 = arith.constant 0 : index
    %0 = vector.load %arg0[%c0, %c0_0] : memref<2x256xbf16, #tpu.memory_space<vmem>>, vector<2x256xbf16>
    %c0_1 = arith.constant 0 : index
    %c0_2 = arith.constant 0 : index
    %1 = vector.load %arg1[%c0_1, %c0_2] : memref<256x120xbf16, #tpu.memory_space<vmem>>, vector<256x120xbf16>
    %cst = arith.constant dense<0.000000e+00> : vector<2x120xf32>
    %2 = tpu.matmul %0, %1, %cst {dimension_numbers = #tpu.dot_dimension_numbers<[1], [0], [0], [1], [0, 0, 1, 1], [], []>} : vector<2x256xbf16>, vector<256x120xbf16>, vector<2x120xf32> -> vector<2x120xf32>
    %c0_3 = arith.constant 0 : index
    %c0_4 = arith.constant 0 : index
    %3 = vector.load %arg2[%c0_3, %c0_4] : memref<1x120xf32, #tpu.memory_space<vmem>>, vector<1x120xf32>
    %4 = vector.broadcast %3 : vector<1x120xf32> to vector<2x120xf32>
    %5 = arith.addf %2, %4 : vector<2x120xf32>
    %cst_5 = arith.constant 0.000000e+00 : f32
    %6 = vector.broadcast %cst_5 : f32 to vector<2x120xf32>
    %7 = arith.maximumf %5, %6 : vector<2x120xf32>
    %8 = arith.truncf %7 : vector<2x120xf32> to vector<2x120xbf16>
    %c0_6 = arith.constant 0 : index
    %c0_7 = arith.constant 0 : index
    %9 = vector.load %arg3[%c0_6, %c0_7] : memref<120x84xbf16, #tpu.memory_space<vmem>>, vector<120x84xbf16>
    %cst_8 = arith.constant dense<0.000000e+00> : vector<2x84xf32>
    %10 = tpu.matmul %8, %9, %cst_8 {dimension_numbers = #tpu.dot_dimension_numbers<[1], [0], [0], [1], [0, 0, 1, 1], [], []>} : vector<2x120xbf16>, vector<120x84xbf16>, vector<2x84xf32> -> vector<2x84xf32>
    %c0_9 = arith.constant 0 : index
    %c0_10 = arith.constant 0 : index
    %11 = vector.load %arg4[%c0_9, %c0_10] : memref<1x84xf32, #tpu.memory_space<vmem>>, vector<1x84xf32>
    %12 = vector.broadcast %11 : vector<1x84xf32> to vector<2x84xf32>
    %13 = arith.addf %10, %12 : vector<2x84xf32>
    %cst_11 = arith.constant 0.000000e+00 : f32
    %14 = vector.broadcast %cst_11 : f32 to vector<2x84xf32>
    %15 = arith.maximumf %13, %14 : vector<2x84xf32>
    %16 = arith.truncf %15 : vector<2x84xf32> to vector<2x84xbf16>
    %c0_12 = arith.constant 0 : index
    %c0_13 = arith.constant 0 : index
    %17 = vector.load %arg5[%c0_12, %c0_13] : memref<84x10xbf16, #tpu.memory_space<vmem>>, vector<84x10xbf16>
    %cst_14 = arith.constant dense<0.000000e+00> : vector<2x10xf32>
    %18 = tpu.matmul %16, %17, %cst_14 {dimension_numbers = #tpu.dot_dimension_numbers<[1], [0], [0], [1], [0, 0, 1, 1], [], []>} : vector<2x84xbf16>, vector<84x10xbf16>, vector<2x10xf32> -> vector<2x10xf32>
    %c0_15 = arith.constant 0 : index
    %c0_16 = arith.constant 0 : index
    %19 = vector.load %arg6[%c0_15, %c0_16] : memref<1x10xf32, #tpu.memory_space<vmem>>, vector<1x10xf32>
    %20 = vector.broadcast %19 : vector<1x10xf32> to vector<2x10xf32>
    %21 = arith.addf %18, %20 : vector<2x10xf32>
    %c0_17 = arith.constant 0 : index
    %c0_18 = arith.constant 0 : index
    %22 = vector.load %arg7[%c0_17, %c0_18] : memref<2x10xf32, #tpu.memory_space<vmem>>, vector<2x10xf32>
    tpu.vector_store %arg7[%c0_17, %c0_18], %21 {strides = array<i32>} : memref<2x10xf32, #tpu.memory_space<vmem>>, vector<2x10xf32>,
    return
  }
}

</mosaic_0001>

<bundles_post_ra>
// kernel: simple_cnn_forward.3
= control target key start
LH: loop header
LB: loop body
LE: loop exit
PB: predicated region body
PF: predicated region fallthrough
CT: control target
= control target key end

     0   :  { %s1854_s21 = smov 0   ;;  %s2222_s0 = inlined_call_operand.vmem [shape: bf16[2,144,25], index: 0, kind: input, shape index: {}]   ;;  %s2223_s1 = inlined_call_operand.vmem [shape: bf16[2,144,25], index: 1, kind: input, shape index: {}]   ;;  %s2224_s2 = inlined_call_operand.vmem [shape: bf16[2,144,25], index: 2, kind: input, shape index: {}]   ;;  %s2225_s3 = inlined_call_operand.vmem [shape: bf16[2,144,25], index: 3, kind: input, shape index: {}]   ;;  %s2226_s4 = inlined_call_operand.vmem [shape: bf16[25,6], index: 4, kind: input, shape index: {}]   ;;  %s2227_s5 = inlined_call_operand.vmem [shape: f32[1,6], index: 5, kind: input, shape index: {}]   ;;  %s2228_s6 = inlined_call_operand.vmem [shape: bf16[2,144,6], index: 6, kind: output, shape index: {}]  }
   0x1 LB: > { %s1431_s22 = sadd.s32 4294967295, %s1814_s21   ;;  %p1435_p0 = scmp.ge.s32.totalorder %s1814_s21, 1  ;;  %s1814_s21 = sphi %s1854_s21, %s16_s21  }
   0x2   : > { %p242_p1 = scmp.lt.s32.totalorder %s1814_s21, 3 }
   0x4   : > { %p243_p2 = pnand %p1435_p0, %p242_p1 }
   0x5   : > { %v1770_v0 = vld [vmem:[%s2226_s4] sm:$0xff] (!%p243_p2)   ;;  %v1816_v1 = vmov (!%p243_p2), 0.0   ;;  %v1771_v2 = vld [vmem:[%s2226_s4 + $0x8] sm:$0x1f] (!%p243_p2)   ;;  %vm426_vm0 = vcmask (!%p243_p2), 1043456   ;;  %vm427_vm1 = vcmask (!%p243_p2), 1044480  }
   0x6   : > { %246 = sbr.rel (%p243_p2) target bundleno = 380 (0x17c), region = 44  ;;  %1598 = vmatprep.subr.bf16.mxu0 (!%p243_p2), %v1816_v1  ;;  %1638 = vmatprep.subr.bf16.mxu1 (!%p243_p2), %v1816_v1  ;;  %p287_p3 = scmp.lt.s32.totalorder (!%p243_p2), %s1431_s22, 1  ;;  %v1817_v3 = vmov (!%p243_p2), 65535   ;;  %vm1818_vm2 = vmmov (!%p243_p2), 0   ;;  %vm398_vm3 = vcmask (!%p243_p2), 203776   ;;  %vm1321_vm4 = vcmask (!%p243_p2), 44032  }
   0x7   : > { %1599 = vmatpush3.bf16.msra.mxu0 (!%p243_p2), %v1770_v0  ;;  %1639 = vmatpush3.bf16.msra.mxu1 (!%p243_p2), %v1770_v0  ;;  %v428_v4 = vsel (!%p243_p2), %vm426_vm0, 4294967295, %v1817_v3  ;;  %v2049_v43 = vld [vmem:[%s2227_s5] ss:$0 sm:$0xff] (!%p243_p2) }
   0x8   : > { %1600 = vmatprep.subr.bf16.mxu0 (!%p243_p2), %v1816_v1  ;;  %1640 = vmatprep.subr.bf16.mxu1 (!%p243_p2), %v1816_v1  ;;  %v429_v5 = vsel (!%p243_p2), %vm427_vm1, %v428_v4, 0 }
   0x9   : > { %1602 = vmatprep.mubr.msk.bf16.mxu0 (!%p243_p2), %vm1818_vm2, %v1816_v1  ;;  %1642 = vmatprep.mubr.msk.bf16.mxu1 (!%p243_p2), %vm1818_vm2, %v1816_v1  ;;  %v431_v6 = vand.u32 (!%p243_p2), %v1771_v2, %v429_v5 }
   0xb   : > { %1601 = vmatpush3.bf16.msra.mxu0 (!%p243_p2), %v431_v6  ;;  %1641 = vmatpush3.bf16.msra.mxu1 (!%p243_p2), %v431_v6 }
   0xc   : > { %1678 = vmatprep.subr.bf16.mxu0 (!%p243_p2), %v1816_v1  ;;  %1718 = vmatprep.subr.bf16.mxu1 (!%p243_p2), %v1816_v1 }
   0xd   : > { %s2230_s22 = smov (!%p287_p3, %s1431_s22), 1 }
   0xe   : > { %s1876_s27 = smul.u32 72, %s2230_s22 }
  0x10   : > { %s1882_s30 = scalar_lea.vmem %s2222_s0, %s1876_s27  ;;  %s1888_s9 = scalar_lea.vmem %s2223_s1, %s1876_s27 }
  0x11   : > { %v1772_v7 = vld [vmem:[%s1882_s30] sm:$0xff]   ;;  %v1774_v9 = vld [vmem:[%s1882_s30 + $0x8] sm:$0xff]   ;;  %v1776_v11 = vld [vmem:[%s1882_s30 + $0x10] sm:$0xff]   ;;  %s1916_s12 = scalar_lea.vmem %s2224_s2, %s1876_s27  ;;  %s1923_s15 = scalar_lea.vmem %s2225_s3, %s1876_s27 }
  0x12   : > { %v1773_v8 = vld [vmem:[%s1888_s9] sm:$0xff]   ;;  %1603 = vmatmul.mubr.msk.bf16.vlgmr.msra.gmra.mrb[0].mxu0 %vm398_vm3, %v1772_v7  ;;  %v1775_v10 = vld [vmem:[%s1888_s9 + $0x8] sm:$0xff]   ;;  %v1777_v12 = vld [vmem:[%s1888_s9 + $0x10] sm:$0xff]   ;;  %s2132_s20 = scalar_lea.vmem %s2228_s6, %s1876_s27 }
  0x13   : > { %1643 = vmatmul.mubr.msk.bf16.vlgmr.msra.gmra.mrb[0].mxu1 %vm398_vm3, %v1773_v8  ;;  %1679 = vmatpush3.bf16.msra.mxu0 %v1770_v0  ;;  %v1778_v13 = vld [vmem:[%s1882_s30 + $0x18] sm:$0xff]   ;;  %v1780_v15 = vld [vmem:[%s1882_s30 + $0x20] sm:$0xff]   ;;  %v1782_v17 = vld [vmem:[%s1882_s30 + $0x28] sm:$0xff]  }
  0x14   : > { %1719 = vmatpush3.bf16.msra.mxu1 %v1770_v0  ;;  %1606 = vmatprep.mubr.msk.bf16.mxu0 %vm1818_vm2, %v1816_v1  ;;  %v1779_v14 = vld [vmem:[%s1888_s9 + $0x18] sm:$0xff]   ;;  %v1781_v16 = vld [vmem:[%s1888_s9 + $0x20] sm:$0xff]   ;;  %v1783_v18 = vld [vmem:[%s1888_s9 + $0x28] sm:$0xff]  }
  0x15   : > { %1646 = vmatprep.mubr.msk.bf16.mxu1 %vm1818_vm2, %v1816_v1  ;;  %1680 = vmatprep.subr.bf16.mxu0 %v1816_v1  ;;  %v1784_v19 = vld [vmem:[%s1882_s30 + $0x30] sm:$0xff]   ;;  %v1786_v21 = vld [vmem:[%s1882_s30 + $0x38] sm:$0xff]   ;;  %v1788_v23 = vld [vmem:[%s1882_s30 + $0x40] sm:$0xff]  }
  0x16   : > { %1720 = vmatprep.subr.bf16.mxu1 %v1816_v1  ;;  %v1785_v20 = vld [vmem:[%s1888_s9 + $0x30] sm:$0xff]   ;;  %v1787_v22 = vld [vmem:[%s1888_s9 + $0x38] sm:$0xff]   ;;  %v1789_v24 = vld [vmem:[%s1888_s9 + $0x40] sm:$0xff]  }
  0x17   : > { %1681 = vmatpush3.bf16.msra.mxu0 %v431_v6  ;;  %v1790_v25 = vld [vmem:[%s1916_s12] sm:$0xff]   ;;  %v1792_v27 = vld [vmem:[%s1916_s12 + $0x8] sm:$0xff]   ;;  %v1794_v29 = vld [vmem:[%s1916_s12 + $0x10] sm:$0xff]  }
  0x18   : > { %1721 = vmatpush3.bf16.msra.mxu1 %v431_v6  ;;  %v1791_v26 = vld [vmem:[%s1923_s15] sm:$0xff]   ;;  %v1793_v28 = vld [vmem:[%s1923_s15 + $0x8] sm:$0xff]   ;;  %v1795_v30 = vld [vmem:[%s1923_s15 + $0x10] sm:$0xff]  }
  0x19   : > { %v1796_v31 = vld [vmem:[%s1916_s12 + $0x18] sm:$0xff]   ;;  %v1798_v33 = vld [vmem:[%s1916_s12 + $0x20] sm:$0xff]   ;;  %v1800_v35 = vld [vmem:[%s1916_s12 + $0x28] sm:$0xff]  }
  0x1a   : > { %1607 = vmatmul.mubr.msk.bf16.gmra.mrb[4].mxu0 %vm398_vm3, %v1774_v9  ;;  %v1797_v32 = vld [vmem:[%s1923_s15 + $0x18] sm:$0xff]   ;;  %v1799_v34 = vld [vmem:[%s1923_s15 + $0x20] sm:$0xff]   ;;  %v1801_v36 = vld [vmem:[%s1923_s15 + $0x28] sm:$0xff]  }
  0x1b   : > { %1647 = vmatmul.mubr.msk.bf16.gmra.mrb[4].mxu1 %vm398_vm3, %v1775_v10  ;;  %1610 = vmatprep.mubr.msk.bf16.mxu0 %vm1818_vm2, %v1816_v1  ;;  %v1802_v37 = vld [vmem:[%s1916_s12 + $0x30] sm:$0xff]   ;;  %v1804_v39 = vld [vmem:[%s1916_s12 + $0x38] sm:$0xff]   ;;  %v1806_v41 = vld [vmem:[%s1916_s12 + $0x40] sm:$0xff]  }
  0x1c   : > { %1650 = vmatprep.mubr.msk.bf16.mxu1 %vm1818_vm2, %v1816_v1  ;;  %v1803_v38 = vld [vmem:[%s1923_s15 + $0x30] sm:$0xff]   ;;  %v1805_v40 = vld [vmem:[%s1923_s15 + $0x38] sm:$0xff]   ;;  %v1807_v42 = vld [vmem:[%s1923_s15 + $0x40] sm:$0xff]  }
  0x22   : > { %1611 = vmatmul.mubr.msk.bf16.gmra.mrb[8].mxu0 %vm398_vm3, %v1776_v11 }
  0x23   : > { %1651 = vmatmul.mubr.msk.bf16.gmra.mrb[8].mxu1 %vm398_vm3, %v1777_v12  ;;  %1614 = vmatprep.mubr.msk.bf16.mxu0 %vm1818_vm2, %v1816_v1 }
  0x24   : > { %1654 = vmatprep.mubr.msk.bf16.mxu1 %vm1818_vm2, %v1816_v1 }
  0x2a   : > { %1615 = vmatmul.mubr.msk.bf16.gmra.mrb[12].mxu0 %vm398_vm3, %v1778_v13 }
  0x2b   : > { %1655 = vmatmul.mubr.msk.bf16.gmra.mrb[12].mxu1 %vm398_vm3, %v1779_v14  ;;  %1618 = vmatprep.mubr.msk.bf16.mxu0 %vm1818_vm2, %v1816_v1 }
  0x2c   : > { %1658 = vmatprep.mubr.msk.bf16.mxu1 %vm1818_vm2, %v1816_v1 }
  0x32   : > { %1619 = vmatmul.mubr.msk.bf16.gmra.mrb[16].mxu0 %vm398_vm3, %v1780_v15 }
  0x33   : > { %1659 = vmatmul.mubr.msk.bf16.gmra.mrb[16].mxu1 %vm398_vm3, %v1781_v16  ;;  %1622 = vmatprep.mubr.msk.bf16.mxu0 %vm1818_vm2, %v1816_v1 }
  0x34   : > { %1662 = vmatprep.mubr.msk.bf16.mxu1 %vm1818_vm2, %v1816_v1 }
  0x3a   : > { %1623 = vmatmul.mubr.msk.bf16.gmra.mrb[20].mxu0 %vm398_vm3, %v1782_v17 }
  0x3b   : > { %1663 = vmatmul.mubr.msk.bf16.gmra.mrb[20].mxu1 %vm398_vm3, %v1783_v18  ;;  %1626 = vmatprep.mubr.msk.bf16.mxu0 %vm1818_vm2, %v1816_v1 }
  0x3c   : > { %1666 = vmatprep.mubr.msk.bf16.mxu1 %vm1818_vm2, %v1816_v1 }
  0x42   : > { %1627 = vmatmul.mubr.msk.bf16.gmra.mrb[24].mxu0 %vm398_vm3, %v1784_v19 }
  0x43   : > { %1667 = vmatmul.mubr.msk.bf16.gmra.mrb[24].mxu1 %vm398_vm3, %v1785_v20  ;;  %1630 = vmatprep.mubr.msk.bf16.mxu0 %vm1818_vm2, %v1816_v1 }
  0x44   : > { %1670 = vmatprep.mubr.msk.bf16.mxu1 %vm1818_vm2, %v1816_v1 }
  0x4a   : > { %1631 = vmatmul.mubr.msk.bf16.gmra.mrb[28].mxu0 %vm398_vm3, %v1786_v21 }
  0x4b   : > { %1671 = vmatmul.mubr.msk.bf16.gmra.mrb[28].mxu1 %vm398_vm3, %v1787_v22  ;;  %1634 = vmatprep.mubr.msk.bf16.mxu0 %vm1818_vm2, %v1816_v1 }
  0x4c   : > { %1674 = vmatprep.mubr.msk.bf16.mxu1 %vm1818_vm2, %v1816_v1 }
  0x52   : > { %1635 = vmatmul.mubr.msk.bf16.gmra.mrb[32].mxu0 %vm398_vm3, %v1788_v23 }
  0x53   : > { %1675 = vmatmul.mubr.msk.bf16.gmra.mrb[32].mxu1 %vm398_vm3, %v1789_v24  ;;  %1682 = vmatprep.mubr.msk.bf16.mxu0 %vm1818_vm2, %v1816_v1 }
  0x54   : > { %1722 = vmatprep.mubr.msk.bf16.mxu1 %vm1818_vm2, %v1816_v1 }
  0x5a   : > { %1683 = vmatmul.mubr.msk.bf16.vlgmr.msra.gmra.mrb[36].mxu0 %vm398_vm3, %v1790_v25 }
  0x5b   : > { %1723 = vmatmul.mubr.msk.bf16.vlgmr.msra.gmra.mrb[36].mxu1 %vm398_vm3, %v1791_v26  ;;  %1686 = vmatprep.mubr.msk.bf16.mxu0 %vm1818_vm2, %v1816_v1 }
  0x5c   : > { %1726 = vmatprep.mubr.msk.bf16.mxu1 %vm1818_vm2, %v1816_v1 }
  0x62   : > { %1687 = vmatmul.mubr.msk.bf16.gmra.mrb[40].mxu0 %vm398_vm3, %v1792_v27 }
  0x63   : > { %1727 = vmatmul.mubr.msk.bf16.gmra.mrb[40].mxu1 %vm398_vm3, %v1793_v28  ;;  %1690 = vmatprep.mubr.msk.bf16.mxu0 %vm1818_vm2, %v1816_v1 }
  0x64   : > { %1730 = vmatprep.mubr.msk.bf16.mxu1 %vm1818_vm2, %v1816_v1 }
  0x6a   : > { %1691 = vmatmul.mubr.msk.bf16.gmra.mrb[44].mxu0 %vm398_vm3, %v1794_v29 }
  0x6b   : > { %1731 = vmatmul.mubr.msk.bf16.gmra.mrb[44].mxu1 %vm398_vm3, %v1795_v30  ;;  %1694 = vmatprep.mubr.msk.bf16.mxu0 %vm1818_vm2, %v1816_v1 }
  0x6c   : > { %1734 = vmatprep.mubr.msk.bf16.mxu1 %vm1818_vm2, %v1816_v1 }
  0x72   : > { %1695 = vmatmul.mubr.msk.bf16.gmra.mrb[48].mxu0 %vm398_vm3, %v1796_v31 }
  0x73   : > { %1735 = vmatmul.mubr.msk.bf16.gmra.mrb[48].mxu1 %vm398_vm3, %v1797_v32  ;;  %1698 = vmatprep.mubr.msk.bf16.mxu0 %vm1818_vm2, %v1816_v1 }
  0x74   : > { %1738 = vmatprep.mubr.msk.bf16.mxu1 %vm1818_vm2, %v1816_v1 }
  0x7a   : > { %1699 = vmatmul.mubr.msk.bf16.gmra.mrb[52].mxu0 %vm398_vm3, %v1798_v33 }
  0x7b   : > { %1739 = vmatmul.mubr.msk.bf16.gmra.mrb[52].mxu1 %vm398_vm3, %v1799_v34  ;;  %1702 = vmatprep.mubr.msk.bf16.mxu0 %vm1818_vm2, %v1816_v1 }
  0x7c   : > { %1742 = vmatprep.mubr.msk.bf16.mxu1 %vm1818_vm2, %v1816_v1 }
  0x82   : > { %1703 = vmatmul.mubr.msk.bf16.gmra.mrb[56].mxu0 %vm398_vm3, %v1800_v35 }
  0x83   : > { %1743 = vmatmul.mubr.msk.bf16.gmra.mrb[56].mxu1 %vm398_vm3, %v1801_v36  ;;  %1706 = vmatprep.mubr.msk.bf16.mxu0 %vm1818_vm2, %v1816_v1 }
  0x84   : > { %1746 = vmatprep.mubr.msk.bf16.mxu1 %vm1818_vm2, %v1816_v1 }
  0x8a   : > { %1707 = vmatmul.mubr.msk.bf16.gmra.mrb[60].mxu0 %vm398_vm3, %v1802_v37 }
  0x8b   : > { %1747 = vmatmul.mubr.msk.bf16.gmra.mrb[60].mxu1 %vm398_vm3, %v1803_v38  ;;  %1710 = vmatprep.mubr.msk.bf16.mxu0 %vm1818_vm2, %v1816_v1 }
  0x8c   : > { %1750 = vmatprep.mubr.msk.bf16.mxu1 %vm1818_vm2, %v1816_v1 }
  0x92   : > { %1711 = vmatmul.mubr.msk.bf16.gmra.mrb[64].mxu0 %vm398_vm3, %v1804_v39 }
  0x93   : > { %1751 = vmatmul.mubr.msk.bf16.gmra.mrb[64].mxu1 %vm398_vm3, %v1805_v40  ;;  %1714 = vmatprep.mubr.msk.bf16.mxu0 %vm1818_vm2, %v1816_v1 }
  0x94   : > { %1754 = vmatprep.mubr.msk.bf16.mxu1 %vm1818_vm2, %v1816_v1 }
  0x9a   : > { %1715 = vmatmul.mubr.msk.bf16.gmra.mrb[68].mxu0 %vm398_vm3, %v1806_v41 }
  0x9b   : > { %1755 = vmatmul.mubr.msk.bf16.gmra.mrb[68].mxu1 %vm398_vm3, %v1807_v42 }
  0xe5   : > { %v467_v44 = vpop.f32.mrb[0].mxu0 }
  0xe6   : > { %v468_v45 = vadd.f32 %v2049_v43, %v467_v44  ;;  %v680_v46 = vpop.f32.mrb[0].mxu1  ;;  %v1604_v47 = vpop.f32.mrb[1].mxu0 }
  0xe7   : > { %v681_v48 = vadd.f32 %v2049_v43, %v680_v46  ;;  %v1644_v49 = vpop.f32.mrb[1].mxu1  ;;  %v470_v50 = vpop.f32.mrb[2].mxu0 }
  0xe8   : > { %v538_v51 = vmax.f32 %v468_v45, 0.0  ;;  %v471_v52 = vadd.f32 %v2049_v43, %v470_v50  ;;  %v683_v53 = vpop.f32.mrb[2].mxu1  ;;  %v1605_v54 = vpop.f32.mrb[3].mxu0 }
  0xe9   : > { %v751_v55 = vmax.f32 %v681_v48, 0.0  ;;  %v684_v56 = vadd.f32 %v2049_v43, %v683_v53  ;;  %v1645_v57 = vpop.f32.mrb[3].mxu1 }
  0xea   : > { %v539_v58 = vmax.f32 %v471_v52, 0.0 }
  0xeb   : > { %v2055_v59 = vmax.f32 %v538_v51, %v751_v55  ;;  %v752_v60 = vmax.f32 %v684_v56, 0.0 }
  0xed   : > { %v2057_v61 = vmax.f32 %v539_v58, %v752_v60  ;;  %v475_v62 = vpop.f32.mrb[4].mxu0 }
  0xee   : > { %v476_v63 = vadd.f32 %v2049_v43, %v475_v62  ;;  %v688_v0 = vpop.f32.mrb[4].mxu1  ;;  %v1608_v1 = vpop.f32.mrb[5].mxu0 }
  0xef   : > { %v689_v2 = vadd.f32 %v2049_v43, %v688_v0  ;;  %v1648_v3 = vpop.f32.mrb[5].mxu1  ;;  %v478_v4 = vpop.f32.mrb[6].mxu0 }
  0xf0   : > { %v540_v5 = vmax.f32 %v476_v63, 0.0  ;;  %v479_v6 = vadd.f32 %v2049_v43, %v478_v4  ;;  %v691_v7 = vpop.f32.mrb[6].mxu1  ;;  %v1609_v8 = vpop.f32.mrb[7].mxu0 }
  0xf1   : > { %v753_v9 = vmax.f32 %v689_v2, 0.0  ;;  %v692_v10 = vadd.f32 %v2049_v43, %v691_v7  ;;  %v1649_v11 = vpop.f32.mrb[7].mxu1 }
  0xf2   : > { %v541_v12 = vmax.f32 %v479_v6, 0.0 }
  0xf3   : > { %v2063_v13 = vmax.f32 %v540_v5, %v753_v9  ;;  %v754_v14 = vmax.f32 %v692_v10, 0.0 }
  0xf5   : > { %v2065_v15 = vmax.f32 %v541_v12, %v754_v14  ;;  %v483_v16 = vpop.f32.mrb[8].mxu0 }
  0xf6   : > { %v484_v17 = vadd.f32 %v2049_v43, %v483_v16  ;;  %v696_v18 = vpop.f32.mrb[8].mxu1  ;;  %v1612_v19 = vpop.f32.mrb[9].mxu0 }
  0xf7   : > { %v697_v20 = vadd.f32 %v2049_v43, %v696_v18  ;;  %v1652_v21 = vpop.f32.mrb[9].mxu1  ;;  %v486_v22 = vpop.f32.mrb[10].mxu0 }
  0xf8   : > { %v542_v23 = vmax.f32 %v484_v17, 0.0  ;;  %v487_v24 = vadd.f32 %v2049_v43, %v486_v22  ;;  %v699_v25 = vpop.f32.mrb[10].mxu1  ;;  %v1613_v26 = vpop.f32.mrb[11].mxu0 }
  0xf9   : > { %v755_v27 = vmax.f32 %v697_v20, 0.0  ;;  %v700_v28 = vadd.f32 %v2049_v43, %v699_v25  ;;  %v1653_v29 = vpop.f32.mrb[11].mxu1 }
  0xfa   : > { %v543_v30 = vmax.f32 %v487_v24, 0.0 }
  0xfb   : > { %v2071_v31 = vmax.f32 %v542_v23, %v755_v27  ;;  %v756_v32 = vmax.f32 %v700_v28, 0.0 }
  0xfd   : > { %v2073_v33 = vmax.f32 %v543_v30, %v756_v32  ;;  %v491_v34 = vpop.f32.mrb[12].mxu0 }
  0xfe   : > { %v492_v35 = vadd.f32 %v2049_v43, %v491_v34  ;;  %v704_v36 = vpop.f32.mrb[12].mxu1  ;;  %v1616_v37 = vpop.f32.mrb[13].mxu0 }
  0xff   : > { %v705_v38 = vadd.f32 %v2049_v43, %v704_v36  ;;  %v1656_v39 = vpop.f32.mrb[13].mxu1  ;;  %v494_v40 = vpop.f32.mrb[14].mxu0 }
 0x100   : > { %v544_v41 = vmax.f32 %v492_v35, 0.0  ;;  %v495_v42 = vadd.f32 %v2049_v43, %v494_v40  ;;  %v707_v44 = vpop.f32.mrb[14].mxu1  ;;  %v1617_v45 = vpop.f32.mrb[15].mxu0 }
 0x101   : > { %v757_v46 = vmax.f32 %v705_v38, 0.0  ;;  %v708_v47 = vadd.f32 %v2049_v43, %v707_v44  ;;  %v1657_v48 = vpop.f32.mrb[15].mxu1 }
 0x102   : > { %v545_v49 = vmax.f32 %v495_v42, 0.0 }
 0x103   : > { %v2079_v50 = vmax.f32 %v544_v41, %v757_v46  ;;  %v758_v51 = vmax.f32 %v708_v47, 0.0 }
 0x105   : > { %v2081_v52 = vmax.f32 %v545_v49, %v758_v51  ;;  %v499_v53 = vpop.f32.mrb[16].mxu0 }
 0x106   : > { %v500_v54 = vadd.f32 %v2049_v43, %v499_v53  ;;  %v712_v55 = vpop.f32.mrb[16].mxu1  ;;  %v1620_v56 = vpop.f32.mrb[17].mxu0 }
 0x107   : > { %v713_v57 = vadd.f32 %v2049_v43, %v712_v55  ;;  %v1660_v58 = vpop.f32.mrb[17].mxu1  ;;  %v502_v60 = vpop.f32.mrb[18].mxu0 }
 0x108   : > { %v546_v62 = vmax.f32 %v500_v54, 0.0  ;;  %v503_v63 = vadd.f32 %v2049_v43, %v502_v60  ;;  %v715_v0 = vpop.f32.mrb[18].mxu1  ;;  %v1621_v1 = vpop.f32.mrb[19].mxu0 }
 0x109   : > { %v759_v2 = vmax.f32 %v713_v57, 0.0  ;;  %v716_v3 = vadd.f32 %v2049_v43, %v715_v0  ;;  %v1661_v4 = vpop.f32.mrb[19].mxu1 }
 0x10a   : > { %v547_v5 = vmax.f32 %v503_v63, 0.0 }
 0x10b   : > { %v2087_v6 = vmax.f32 %v546_v62, %v759_v2  ;;  %v760_v7 = vmax.f32 %v716_v3, 0.0 }
 0x10d   : > { %v2089_v8 = vmax.f32 %v547_v5, %v760_v7  ;;  %v507_v9 = vpop.f32.mrb[20].mxu0 }
 0x10e   : > { %v508_v10 = vadd.f32 %v2049_v43, %v507_v9  ;;  %v720_v11 = vpop.f32.mrb[20].mxu1  ;;  %v1624_v12 = vpop.f32.mrb[21].mxu0 }
 0x10f   : > { %v721_v14 = vadd.f32 %v2049_v43, %v720_v11  ;;  %v1664_v16 = vpop.f32.mrb[21].mxu1  ;;  %v510_v17 = vpop.f32.mrb[22].mxu0 }
 0x110   : > { %v548_v18 = vmax.f32 %v508_v10, 0.0  ;;  %v511_v19 = vadd.f32 %v2049_v43, %v510_v17  ;;  %v723_v20 = vpop.f32.mrb[22].mxu1  ;;  %v1625_v21 = vpop.f32.mrb[23].mxu0 }
 0x111   : > { %v761_v22 = vmax.f32 %v721_v14, 0.0  ;;  %v724_v23 = vadd.f32 %v2049_v43, %v723_v20  ;;  %v1665_v24 = vpop.f32.mrb[23].mxu1 }
 0x112   : > { %v549_v25 = vmax.f32 %v511_v19, 0.0 }
 0x113   : > { %v2095_v26 = vmax.f32 %v548_v18, %v761_v22  ;;  %v762_v27 = vmax.f32 %v724_v23, 0.0 }
 0x115   : > { %v2097_v28 = vmax.f32 %v549_v25, %v762_v27  ;;  %v515_v29 = vpop.f32.mrb[24].mxu0 }
 0x116   : > { %v516_v30 = vadd.f32 %v2049_v43, %v515_v29  ;;  %v728_v32 = vpop.f32.mrb[24].mxu1  ;;  %v1628_v34 = vpop.f32.mrb[25].mxu0 }
 0x117   : > { %v729_v35 = vadd.f32 %v2049_v43, %v728_v32  ;;  %v1668_v36 = vpop.f32.mrb[25].mxu1  ;;  %v518_v37 = vpop.f32.mrb[26].mxu0 }
 0x118   : > { %v550_v38 = vmax.f32 %v516_v30, 0.0  ;;  %v519_v39 = vadd.f32 %v2049_v43, %v518_v37  ;;  %v731_v40 = vpop.f32.mrb[26].mxu1  ;;  %v1629_v41 = vpop.f32.mrb[27].mxu0 }
 0x119   : > { %v763_v42 = vmax.f32 %v729_v35, 0.0  ;;  %v732_v44 = vadd.f32 %v2049_v43, %v731_v40  ;;  %v1669_v45 = vpop.f32.mrb[27].mxu1 }
 0x11a   : > { %v551_v46 = vmax.f32 %v519_v39, 0.0 }
 0x11b   : > { %v2103_v47 = vmax.f32 %v550_v38, %v763_v42  ;;  %v764_v48 = vmax.f32 %v732_v44, 0.0 }
 0x11d   : > { %v2105_v49 = vmax.f32 %v551_v46, %v764_v48  ;;  %v523_v51 = vpop.f32.mrb[28].mxu0 }
 0x11e   : > { %v524_v53 = vadd.f32 %v2049_v43, %v523_v51  ;;  %v736_v54 = vpop.f32.mrb[28].mxu1  ;;  %v1632_v55 = vpop.f32.mrb[29].mxu0 }
 0x11f   : > { %v737_v56 = vadd.f32 %v2049_v43, %v736_v54  ;;  %v1672_v57 = vpop.f32.mrb[29].mxu1  ;;  %v526_v58 = vpop.f32.mrb[30].mxu0 }
 0x120   : > { %v552_v60 = vmax.f32 %v524_v53, 0.0  ;;  %v527_v62 = vadd.f32 %v2049_v43, %v526_v58  ;;  %v739_v63 = vpop.f32.mrb[30].mxu1  ;;  %v1633_v0 = vpop.f32.mrb[31].mxu0 }
 0x121   : > { %v765_v1 = vmax.f32 %v737_v56, 0.0  ;;  %v740_v2 = vadd.f32 %v2049_v43, %v739_v63  ;;  %v1673_v3 = vpop.f32.mrb[31].mxu1 }
 0x122   : > { %v553_v4 = vmax.f32 %v527_v62, 0.0 }
 0x123   : > { %v2111_v5 = vmax.f32 %v552_v60, %v765_v1  ;;  %v766_v7 = vmax.f32 %v740_v2, 0.0 }
 0x125   : > { %v2113_v9 = vmax.f32 %v553_v4, %v766_v7  ;;  %v531_v10 = vpop.f32.mrb[32].mxu0 }
 0x126   : > { %v532_v11 = vadd.f32 %v2049_v43, %v531_v10  ;;  %v744_v12 = vpop.f32.mrb[32].mxu1  ;;  %v1636_v14 = vpop.f32.mrb[33].mxu0 }
 0x127   : > { %v745_v16 = vadd.f32 %v2049_v43, %v744_v12  ;;  %v1676_v17 = vpop.f32.mrb[33].mxu1  ;;  %v534_v18 = vpop.f32.mrb[34].mxu0 }
 0x128   : > { %v554_v19 = vmax.f32 %v532_v11, 0.0  ;;  %v535_v20 = vadd.f32 %v2049_v43, %v534_v18  ;;  %v747_v21 = vpop.f32.mrb[34].mxu1  ;;  %v1637_v22 = vpop.f32.mrb[35].mxu0 }
 0x129   : > { %v767_v23 = vmax.f32 %v745_v16, 0.0  ;;  %v748_v24 = vadd.f32 %v2049_v43, %v747_v21  ;;  %v1677_v25 = vpop.f32.mrb[35].mxu1 }
 0x12a   : > { %v555_v27 = vmax.f32 %v535_v20, 0.0 }
 0x12b   : > { %v2119_v29 = vmax.f32 %v554_v19, %v767_v23  ;;  %v768_v30 = vmax.f32 %v748_v24, 0.0 }
 0x12d   : > { %v2121_v32 = vmax.f32 %v555_v27, %v768_v30  ;;  %v911_v34 = vpop.f32.mrb[36].mxu0 }
 0x12e   : > { %v912_v35 = vadd.f32 %v2049_v43, %v911_v34  ;;  %v1124_v36 = vpop.f32.mrb[36].mxu1  ;;  %v1684_v37 = vpop.f32.mrb[37].mxu0 }
 0x12f   : > { %v1125_v38 = vadd.f32 %v2049_v43, %v1124_v36  ;;  %v1724_v39 = vpop.f32.mrb[37].mxu1  ;;  %v914_v40 = vpop.f32.mrb[38].mxu0 }
 0x130   : > { %v982_v41 = vmax.f32 %v912_v35, 0.0  ;;  %v915_v42 = vadd.f32 %v2049_v43, %v914_v40  ;;  %v1127_v44 = vpop.f32.mrb[38].mxu1  ;;  %v1685_v45 = vpop.f32.mrb[39].mxu0 }
 0x131   : > { %v1195_v46 = vmax.f32 %v1125_v38, 0.0  ;;  %v1128_v48 = vadd.f32 %v2049_v43, %v1127_v44  ;;  %v1725_v51 = vpop.f32.mrb[39].mxu1 }
 0x132   : > { %v983_v53 = vmax.f32 %v915_v42, 0.0 }
 0x133   : > { %v1213_v54 = vmax.f32 %v982_v41, %v1195_v46  ;;  %v1196_v55 = vmax.f32 %v1128_v48, 0.0 }
 0x135   : > { %v1231_v56 = vmax.f32 %v2055_v59, %v1213_v54  ;;  %v1214_v57 = vmax.f32 %v983_v53, %v1196_v55  ;;  %v919_v58 = vpop.f32.mrb[40].mxu0 }
 0x136   : > { %v920_v60 = vadd.f32 %v2049_v43, %v919_v58  ;;  %v1132_v62 = vpop.f32.mrb[40].mxu1  ;;  %v1688_v63 = vpop.f32.mrb[41].mxu0 }
 0x137   : > { %v1536_v0 = vpack.c.bf16 %v1231_v56, %v1231_v56  ;;  %v1232_v1 = vmax.f32 %v2057_v61, %v1214_v57  ;;  %v1133_v2 = vadd.f32 %v2049_v43, %v1132_v62  ;;  %v1728_v59 = vpop.f32.mrb[41].mxu1  ;;  %v922_v3 = vpop.f32.mrb[42].mxu0 }
 0x138   : > { %v984_v4 = vmax.f32 %v920_v60, 0.0  ;;  %v923_v7 = vadd.f32 %v2049_v43, %v922_v3  ;;  %v1135_v10 = vpop.f32.mrb[42].mxu1  ;;  %v1689_v11 = vpop.f32.mrb[43].mxu0 }
 0x139   : > { %1322 = vst.msk [vmem:[%s2132_s20] sm:$0xf] %vm1321_vm4, %v1536_v0  ;;  %v1537_v12 = vpack.c.bf16 %v1232_v1, %v1232_v1  ;;  %v1197_v14 = vmax.f32 %v1133_v2, 0.0  ;;  %v1136_v16 = vadd.f32 %v2049_v43, %v1135_v10  ;;  %v1729_v17 = vpop.f32.mrb[43].mxu1 }
 0x13a   : > { %v985_v18 = vmax.f32 %v923_v7, 0.0 }
 0x13b   : > { %1323 = vst.msk [vmem:[%s2132_s20 + $0x4] sm:$0xf] %vm1321_vm4, %v1537_v12  ;;  %v1215_v61 = vmax.f32 %v984_v4, %v1197_v14  ;;  %v1198_v19 = vmax.f32 %v1136_v16, 0.0 }
 0x13d   : > { %v1233_v20 = vmax.f32 %v2063_v13, %v1215_v61  ;;  %v1216_v21 = vmax.f32 %v985_v18, %v1198_v19  ;;  %v927_v22 = vpop.f32.mrb[44].mxu0 }
 0x13e   : > { %v928_v23 = vadd.f32 %v2049_v43, %v927_v22  ;;  %v1140_v24 = vpop.f32.mrb[44].mxu1  ;;  %v1692_v25 = vpop.f32.mrb[45].mxu0 }
 0x13f   : > { %v1538_v27 = vpack.c.bf16 %v1233_v20, %v1233_v20  ;;  %v1234_v30 = vmax.f32 %v2065_v15, %v1216_v21  ;;  %v1141_v34 = vadd.f32 %v2049_v43, %v1140_v24  ;;  %v1732_v35 = vpop.f32.mrb[45].mxu1  ;;  %v930_v36 = vpop.f32.mrb[46].mxu0 }
 0x140   : > { %v986_v37 = vmax.f32 %v928_v23, 0.0  ;;  %v931_v38 = vadd.f32 %v2049_v43, %v930_v36  ;;  %v1143_v39 = vpop.f32.mrb[46].mxu1  ;;  %v1693_v40 = vpop.f32.mrb[47].mxu0 }
 0x141   : > { %1324 = vst.msk [vmem:[%s2132_s20 + $0x8] sm:$0xf] %vm1321_vm4, %v1538_v27  ;;  %v1539_v13 = vpack.c.bf16 %v1234_v30, %v1234_v30  ;;  %v1199_v41 = vmax.f32 %v1141_v34, 0.0  ;;  %v1144_v42 = vadd.f32 %v2049_v43, %v1143_v39  ;;  %v1733_v44 = vpop.f32.mrb[47].mxu1 }
 0x142   : > { %v987_v45 = vmax.f32 %v931_v38, 0.0 }
 0x143   : > { %1325 = vst.msk [vmem:[%s2132_s20 + $0xc] sm:$0xf] %vm1321_vm4, %v1539_v13  ;;  %v1217_v15 = vmax.f32 %v986_v37, %v1199_v41  ;;  %v1200_v46 = vmax.f32 %v1144_v42, 0.0 }
 0x145   : > { %v1235_v48 = vmax.f32 %v2071_v31, %v1217_v15  ;;  %v1218_v51 = vmax.f32 %v987_v45, %v1200_v46  ;;  %v935_v53 = vpop.f32.mrb[48].mxu0 }
 0x146   : > { %v936_v54 = vadd.f32 %v2049_v43, %v935_v53  ;;  %v1148_v55 = vpop.f32.mrb[48].mxu1  ;;  %v1696_v56 = vpop.f32.mrb[49].mxu0 }
 0x147   : > { %v1540_v57 = vpack.c.bf16 %v1235_v48, %v1235_v48  ;;  %v1236_v58 = vmax.f32 %v2073_v33, %v1218_v51  ;;  %v1149_v60 = vadd.f32 %v2049_v43, %v1148_v55  ;;  %v1736_v62 = vpop.f32.mrb[49].mxu1  ;;  %v938_v63 = vpop.f32.mrb[50].mxu0 }
 0x148   : > { %v988_v0 = vmax.f32 %v936_v54, 0.0  ;;  %v939_v1 = vadd.f32 %v2049_v43, %v938_v63  ;;  %v1151_v2 = vpop.f32.mrb[50].mxu1  ;;  %v1697_v59 = vpop.f32.mrb[51].mxu0 }
 0x149   : > { %1326 = vst.msk [vmem:[%s2132_s20 + $0x10] sm:$0xf] %vm1321_vm4, %v1540_v57  ;;  %v1541_v31 = vpack.c.bf16 %v1236_v58, %v1236_v58  ;;  %v1201_v3 = vmax.f32 %v1149_v60, 0.0  ;;  %v1152_v4 = vadd.f32 %v2049_v43, %v1151_v2  ;;  %v1737_v7 = vpop.f32.mrb[51].mxu1 }
 0x14a   : > { %v989_v10 = vmax.f32 %v939_v1, 0.0 }
 0x14b   : > { %1327 = vst.msk [vmem:[%s2132_s20 + $0x14] sm:$0xf] %vm1321_vm4, %v1541_v31  ;;  %v1219_v33 = vmax.f32 %v988_v0, %v1201_v3  ;;  %v1202_v11 = vmax.f32 %v1152_v4, 0.0 }
 0x14d   : > { %v1237_v12 = vmax.f32 %v2079_v50, %v1219_v33  ;;  %v1220_v14 = vmax.f32 %v989_v10, %v1202_v11  ;;  %v943_v16 = vpop.f32.mrb[52].mxu0 }
 0x14e   : > { %v944_v17 = vadd.f32 %v2049_v43, %v943_v16  ;;  %v1156_v18 = vpop.f32.mrb[52].mxu1  ;;  %v1700_v61 = vpop.f32.mrb[53].mxu0 }
 0x14f   : > { %v1542_v19 = vpack.c.bf16 %v1237_v12, %v1237_v12  ;;  %v1238_v20 = vmax.f32 %v2081_v52, %v1220_v14  ;;  %v1157_v21 = vadd.f32 %v2049_v43, %v1156_v18  ;;  %v1740_v22 = vpop.f32.mrb[53].mxu1  ;;  %v946_v23 = vpop.f32.mrb[54].mxu0 }
 0x150   : > { %v990_v24 = vmax.f32 %v944_v17, 0.0  ;;  %v947_v25 = vadd.f32 %v2049_v43, %v946_v23  ;;  %v1159_v27 = vpop.f32.mrb[54].mxu1  ;;  %v1701_v30 = vpop.f32.mrb[55].mxu0 }
 0x151   : > { %1328 = vst.msk [vmem:[%s2132_s20 + $0x18] sm:$0xf] %vm1321_vm4, %v1542_v19  ;;  %v1543_v50 = vpack.c.bf16 %v1238_v20, %v1238_v20  ;;  %v1203_v34 = vmax.f32 %v1157_v21, 0.0  ;;  %v1160_v35 = vadd.f32 %v2049_v43, %v1159_v27  ;;  %v1741_v36 = vpop.f32.mrb[55].mxu1 }
 0x152   : > { %v991_v37 = vmax.f32 %v947_v25, 0.0 }
 0x153   : > { %1329 = vst.msk [vmem:[%s2132_s20 + $0x1c] sm:$0xf] %vm1321_vm4, %v1543_v50  ;;  %v1221_v52 = vmax.f32 %v990_v24, %v1203_v34  ;;  %v1204_v38 = vmax.f32 %v1160_v35, 0.0 }
 0x155   : > { %v1239_v39 = vmax.f32 %v2087_v6, %v1221_v52  ;;  %v1222_v40 = vmax.f32 %v991_v37, %v1204_v38  ;;  %v951_v13 = vpop.f32.mrb[56].mxu0 }
 0x156   : > { %v952_v41 = vadd.f32 %v2049_v43, %v951_v13  ;;  %v1164_v42 = vpop.f32.mrb[56].mxu1  ;;  %v1704_v44 = vpop.f32.mrb[57].mxu0 }
 0x157   : > { %v1544_v45 = vpack.c.bf16 %v1239_v39, %v1239_v39  ;;  %v1240_v15 = vmax.f32 %v2089_v8, %v1222_v40  ;;  %v1165_v46 = vadd.f32 %v2049_v43, %v1164_v42  ;;  %v1744_v48 = vpop.f32.mrb[57].mxu1  ;;  %v954_v51 = vpop.f32.mrb[58].mxu0 }
 0x158   : > { %v992_v53 = vmax.f32 %v952_v41, 0.0  ;;  %v955_v54 = vadd.f32 %v2049_v43, %v954_v51  ;;  %v1167_v55 = vpop.f32.mrb[58].mxu1  ;;  %v1705_v56 = vpop.f32.mrb[59].mxu0 }
 0x159   : > { %1330 = vst.msk [vmem:[%s2132_s20 + $0x20] sm:$0xf] %vm1321_vm4, %v1544_v45  ;;  %v1545_v6 = vpack.c.bf16 %v1240_v15, %v1240_v15  ;;  %v1205_v57 = vmax.f32 %v1165_v46, 0.0  ;;  %v1168_v58 = vadd.f32 %v2049_v43, %v1167_v55  ;;  %v1745_v60 = vpop.f32.mrb[59].mxu1 }
 0x15a   : > { %v993_v62 = vmax.f32 %v955_v54, 0.0 }
 0x15b   : > { %1331 = vst.msk [vmem:[%s2132_s20 + $0x24] sm:$0xf] %vm1321_vm4, %v1545_v6  ;;  %v1223_v8 = vmax.f32 %v992_v53, %v1205_v57  ;;  %v1206_v63 = vmax.f32 %v1168_v58, 0.0 }
 0x15d   : > { %v1241_v0 = vmax.f32 %v2095_v26, %v1223_v8  ;;  %v1224_v1 = vmax.f32 %v993_v62, %v1206_v63  ;;  %v959_v2 = vpop.f32.mrb[60].mxu0 }
 0x15e   : > { %v960_v59 = vadd.f32 %v2049_v43, %v959_v2  ;;  %v1172_v31 = vpop.f32.mrb[60].mxu1  ;;  %v1708_v3 = vpop.f32.mrb[61].mxu0 }
 0x15f   : > { %v1546_v4 = vpack.c.bf16 %v1241_v0, %v1241_v0  ;;  %v1242_v7 = vmax.f32 %v2097_v28, %v1224_v1  ;;  %v1173_v10 = vadd.f32 %v2049_v43, %v1172_v31  ;;  %v1748_v33 = vpop.f32.mrb[61].mxu1  ;;  %v962_v11 = vpop.f32.mrb[62].mxu0 }
 0x160   : > { %v994_v12 = vmax.f32 %v960_v59, 0.0  ;;  %v963_v14 = vadd.f32 %v2049_v43, %v962_v11  ;;  %v1175_v16 = vpop.f32.mrb[62].mxu1  ;;  %v1709_v17 = vpop.f32.mrb[63].mxu0 }
 0x161   : > { %1332 = vst.msk [vmem:[%s2132_s20 + $0x28] sm:$0xf] %vm1321_vm4, %v1546_v4  ;;  %v1547_v26 = vpack.c.bf16 %v1242_v7, %v1242_v7  ;;  %v1207_v18 = vmax.f32 %v1173_v10, 0.0  ;;  %v1176_v61 = vadd.f32 %v2049_v43, %v1175_v16  ;;  %v1749_v19 = vpop.f32.mrb[63].mxu1 }
 0x162   : > { %v995_v20 = vmax.f32 %v963_v14, 0.0 }
 0x163   : > { %1333 = vst.msk [vmem:[%s2132_s20 + $0x2c] sm:$0xf] %vm1321_vm4, %v1547_v26  ;;  %v1225_v28 = vmax.f32 %v994_v12, %v1207_v18  ;;  %v1208_v21 = vmax.f32 %v1176_v61, 0.0 }
 0x165   : > { %v1243_v22 = vmax.f32 %v2103_v47, %v1225_v28  ;;  %v1226_v23 = vmax.f32 %v995_v20, %v1208_v21  ;;  %v967_v24 = vpop.f32.mrb[64].mxu0 }
 0x166   : > { %v968_v25 = vadd.f32 %v2049_v43, %v967_v24  ;;  %v1180_v27 = vpop.f32.mrb[64].mxu1  ;;  %v1712_v30 = vpop.f32.mrb[65].mxu0 }
 0x167   : > { %v1548_v50 = vpack.c.bf16 %v1243_v22, %v1243_v22  ;;  %v1244_v34 = vmax.f32 %v2105_v49, %v1226_v23  ;;  %v1181_v35 = vadd.f32 %v2049_v43, %v1180_v27  ;;  %v1752_v36 = vpop.f32.mrb[65].mxu1  ;;  %v970_v37 = vpop.f32.mrb[66].mxu0 }
 0x168   : > { %v996_v52 = vmax.f32 %v968_v25, 0.0  ;;  %v971_v38 = vadd.f32 %v2049_v43, %v970_v37  ;;  %v1183_v39 = vpop.f32.mrb[66].mxu1  ;;  %v1713_v40 = vpop.f32.mrb[67].mxu0 }
 0x169   : > { %1334 = vst.msk [vmem:[%s2132_s20 + $0x30] sm:$0xf] %vm1321_vm4, %v1548_v50  ;;  %v1549_v47 = vpack.c.bf16 %v1244_v34, %v1244_v34  ;;  %v1209_v13 = vmax.f32 %v1181_v35, 0.0  ;;  %v1184_v41 = vadd.f32 %v2049_v43, %v1183_v39  ;;  %v1753_v42 = vpop.f32.mrb[67].mxu1 }
 0x16a   : > { %v997_v44 = vmax.f32 %v971_v38, 0.0 }
 0x16b   : > { %1335 = vst.msk [vmem:[%s2132_s20 + $0x34] sm:$0xf] %vm1321_vm4, %v1549_v47  ;;  %v1227_v49 = vmax.f32 %v996_v52, %v1209_v13  ;;  %v1210_v45 = vmax.f32 %v1184_v41, 0.0 }
 0x16d   : > { %v1245_v15 = vmax.f32 %v2111_v5, %v1227_v49  ;;  %v1228_v46 = vmax.f32 %v997_v44, %v1210_v45  ;;  %v975_v48 = vpop.f32.mrb[68].mxu0 }
 0x16e   : > { %v976_v51 = vadd.f32 %v2049_v43, %v975_v48  ;;  %v1188_v53 = vpop.f32.mrb[68].mxu1  ;;  %v1716_v54 = vpop.f32.mrb[69].mxu0 }
 0x16f   : > { %v1550_v55 = vpack.c.bf16 %v1245_v15, %v1245_v15  ;;  %v1246_v56 = vmax.f32 %v2113_v9, %v1228_v46  ;;  %v1189_v6 = vadd.f32 %v2049_v43, %v1188_v53  ;;  %v1756_v57 = vpop.f32.mrb[69].mxu1  ;;  %v978_v58 = vpop.f32.mrb[70].mxu0 }
 0x170   : > { %v998_v60 = vmax.f32 %v976_v51, 0.0  ;;  %v979_v62 = vadd.f32 %v2049_v43, %v978_v58  ;;  %v1191_v8 = vpop.f32.mrb[70].mxu1  ;;  %v1717_v5 = vpop.f32.mrb[71].mxu0 }
 0x171   : > { %1336 = vst.msk [vmem:[%s2132_s20 + $0x38] sm:$0xf] %vm1321_vm4, %v1550_v55  ;;  %v1551_v63 = vpack.c.bf16 %v1246_v56, %v1246_v56  ;;  %v1211_v0 = vmax.f32 %v1189_v6, 0.0  ;;  %v1192_v1 = vadd.f32 %v2049_v43, %v1191_v8  ;;  %v1757_v2 = vpop.f32.mrb[71].mxu1 }
 0x172   : > { %v999_v59 = vmax.f32 %v979_v62, 0.0 }
 0x173   : > { %1337 = vst.msk [vmem:[%s2132_s20 + $0x3c] sm:$0xf] %vm1321_vm4, %v1551_v63  ;;  %v1229_v9 = vmax.f32 %v998_v60, %v1211_v0  ;;  %v1212_v31 = vmax.f32 %v1192_v1, 0.0 }
 0x175   : > { %v1247_v3 = vmax.f32 %v2119_v29, %v1229_v9  ;;  %v1230_v4 = vmax.f32 %v999_v59, %v1212_v31 }
 0x177   : > { %v1552_v7 = vpack.c.bf16 %v1247_v3, %v1247_v3  ;;  %v1248_v10 = vmax.f32 %v2121_v32, %v1230_v4 }
 0x179   : > { %1338 = vst.msk [vmem:[%s2132_s20 + $0x40] sm:$0xf] %vm1321_vm4, %v1552_v7  ;;  %v1553_v33 = vpack.c.bf16 %v1248_v10, %v1248_v10 }
 0x17b   : > { %1339 = vst.msk [vmem:[%s2132_s20 + $0x44] sm:$0xf] %vm1321_vm4, %v1553_v33 }
 0x17c PF: > { %s16_s21 = sadd.s32 1, %s1814_s21  }
 0x17d   : > { %p13_p4 = scmp.ge.s32.totalorder %s16_s21, 4  }
 0x17f   :  { %15 = sbr.rel (!%p13_p4) target bundleno = 1 (0x1), region = 83 }

// kernel: simple_cnn_forward.4
= control target key start
LH: loop header
LB: loop body
LE: loop exit
PB: predicated region body
PF: predicated region fallthrough
CT: control target
= control target key end

     0   :  { %s861_s21 = smov 0   ;;  %s1008_s0 = inlined_call_operand.vmem [shape: bf16[2,16,150], index: 0, kind: input, shape index: {}]   ;;  %s1009_s1 = inlined_call_operand.vmem [shape: bf16[2,16,150], index: 1, kind: input, shape index: {}]   ;;  %s1010_s2 = inlined_call_operand.vmem [shape: bf16[2,16,150], index: 2, kind: input, shape index: {}]   ;;  %s1011_s3 = inlined_call_operand.vmem [shape: bf16[2,16,150], index: 3, kind: input, shape index: {}]   ;;  %s1012_s4 = inlined_call_operand.vmem [shape: bf16[150,16], index: 4, kind: input, shape index: {}]   ;;  %s1013_s5 = inlined_call_operand.vmem [shape: f32[1,16], index: 5, kind: input, shape index: {}]   ;;  %s1014_s6 = inlined_call_operand.vmem [shape: bf16[2,16,16], index: 6, kind: output, shape index: {}]  }
   0x1 LB: > { %s737_s22 = sadd.s32 4294967295, %s823_s21   ;;  %p741_p0 = scmp.ge.s32.totalorder %s823_s21, 1  ;;  %s823_s21 = sphi %s861_s21, %s16_s21  }
   0x2   : > { %p242_p1 = scmp.lt.s32.totalorder %s823_s21, 3 }
   0x4   : > { %p243_p2 = pnand %p741_p0, %p242_p1 }
   0x5   : > { %v872_v0 = vld [vmem:[%s1012_s4] sm:$0xff] (!%p243_p2)   ;;  %v825_v1 = vmov (!%p243_p2), 0   ;;  %v881_v2 = vld [vmem:[%s1012_s4 + $0x8] sm:$0xff] (!%p243_p2)   ;;  %p287_p3 = scmp.lt.s32.totalorder (!%p243_p2), %s737_s22, 1  ;;  %v892_v3 = vld [vmem:[%s1012_s4 + $0x10] sm:$0xff] (!%p243_p2)   ;;  %vm407_vm0 = vcmask (!%p243_p2), 179200  }
   0x6   : > { %246 = sbr.rel (%p243_p2) target bundleno = 311 (0x137), region = 44  ;;  %415 = vmatprep.subr.bf16.mxu0 (!%p243_p2), %v825_v1  ;;  %472 = vmatprep.subr.bf16.mxu1 (!%p243_p2), %v825_v1  ;;  %v912_v4 = vld [vmem:[%s1012_s4 + $0x18] sm:$0xff] (!%p243_p2)   ;;  %v799_v7 = vld [vmem:[%s1012_s4 + $0x20] sm:$0xff] (!%p243_p2)   ;;  %v800_v8 = vld [vmem:[%s1012_s4 + $0x28] sm:$0xff] (!%p243_p2)   ;;  %vm411_vm1 = vcmask (!%p243_p2), 1042432   ;;  %vm643_vm2 = vcmask (!%p243_p2), 125952  }
   0x7   : > { %416 = vmatpush1.bf16.msra.mxu0 (!%p243_p2), %v872_v0  ;;  %473 = vmatpush1.bf16.msra.mxu1 (!%p243_p2), %v872_v0  ;;  %v801_v9 = vld [vmem:[%s1012_s4 + $0x30] sm:$0xff] (!%p243_p2)   ;;  %v802_v10 = vld [vmem:[%s1012_s4 + $0x38] sm:$0xff] (!%p243_p2)   ;;  %v803_v11 = vld [vmem:[%s1012_s4 + $0x40] sm:$0xff] (!%p243_p2)  }
   0x8   : > { %417 = vmatprep.subr.bf16.mxu0 (!%p243_p2), %v825_v1  ;;  %474 = vmatprep.subr.bf16.mxu1 (!%p243_p2), %v825_v1  ;;  %v804_v12 = vld [vmem:[%s1012_s4 + $0x48] ss:$0 sps:$4 sm:$0x77] (!%p243_p2)   ;;  %v752_v20 = vld [vmem:[%s1013_s5] ss:$0 sm:$0xff] (!%p243_p2) }
   0x9   : > { %v413_v13 = vsel (!%p243_p2), %vm411_vm1, %v804_v12, 0 }
   0xb   : > { %418 = vmatpush1.bf16.msra.mxu0 (!%p243_p2), %v881_v2  ;;  %475 = vmatpush1.bf16.msra.mxu1 (!%p243_p2), %v881_v2 }
   0xc   : > { %419 = vmatprep.subr.bf16.mxu0 (!%p243_p2), %v825_v1  ;;  %476 = vmatprep.subr.bf16.mxu1 (!%p243_p2), %v825_v1 }
   0xd   : > { %s1016_s22 = smov (!%p287_p3, %s737_s22), 1 }
   0xe   : > { %s779_s29 = sshll.u32 %s1016_s22, 4  ;;  %s783_s12 = sshll.u32 %s1016_s22, 3 }
   0xf   : > { %s900_s8 = scalar_lea.vmem %s1008_s0, %s779_s29  ;;  %s905_s11 = scalar_lea.vmem %s1009_s1, %s779_s29  ;;  %420 = vmatpush1.bf16.msra.mxu0 %v892_v3  ;;  %477 = vmatpush1.bf16.msra.mxu1 %v892_v3 }
  0x10   : > { %v807_v5 = vld [vmem:[%s900_s8 + $0x4] ss:$8 sps:$4 sm:$0xff]   ;;  %421 = vmatprep.subr.bf16.mxu0 %v825_v1  ;;  %478 = vmatprep.subr.bf16.mxu1 %v825_v1  ;;  %s920_s16 = scalar_lea.vmem %s1010_s2, %s779_s29  ;;  %s927_s19 = scalar_lea.vmem %s1011_s3, %s779_s29  ;;  %v805_v14 = vld [vmem:[%s900_s8] ss:$8 sps:$4 sm:$0xff]  }
  0x11   : > { %765 = vmatprep.mubr.msk.bf16.mxu0 %vm407_vm0, %v807_v5  ;;  %v810_v6 = vld [vmem:[%s905_s11 + $0x4] ss:$8 sps:$4 sm:$0xff]   ;;  %v808_v15 = vld [vmem:[%s905_s11] ss:$8 sps:$4 sm:$0xff]   ;;  %s311_s15 = scalar_lea.vmem %s1014_s6, %s783_s12 }
  0x12   : > { %768 = vmatprep.mubr.msk.bf16.mxu1 %vm407_vm0, %v810_v6  ;;  %v811_v16 = vld [vmem:[%s920_s16 + $0x4] ss:$8 sps:$4 sm:$0xff]   ;;  %v815_v18 = vld [vmem:[%s920_s16] ss:$8 sps:$4 sm:$0xff]  }
  0x13   : > { %422 = vmatpush1.bf16.msra.mxu0 %v912_v4  ;;  %479 = vmatpush1.bf16.msra.mxu1 %v912_v4  ;;  %v813_v17 = vld [vmem:[%s927_s19 + $0x4] ss:$8 sps:$4 sm:$0xff]   ;;  %v816_v19 = vld [vmem:[%s927_s19] ss:$8 sps:$4 sm:$0xff]  }
  0x14   : > { %423 = vmatprep.subr.bf16.mxu0 %v825_v1  ;;  %480 = vmatprep.subr.bf16.mxu1 %v825_v1 }
  0x17   : > { %424 = vmatpush1.bf16.msra.mxu0 %v799_v7  ;;  %481 = vmatpush1.bf16.msra.mxu1 %v799_v7 }
  0x18   : > { %425 = vmatprep.subr.bf16.mxu0 %v825_v1  ;;  %482 = vmatprep.subr.bf16.mxu1 %v825_v1 }
  0x1b   : > { %426 = vmatpush1.bf16.msra.mxu0 %v800_v8  ;;  %483 = vmatpush1.bf16.msra.mxu1 %v800_v8 }
  0x1c   : > { %427 = vmatprep.subr.bf16.mxu0 %v825_v1  ;;  %484 = vmatprep.subr.bf16.mxu1 %v825_v1 }
  0x1f   : > { %428 = vmatpush1.bf16.msra.mxu0 %v801_v9  ;;  %485 = vmatpush1.bf16.msra.mxu1 %v801_v9 }
  0x20   : > { %429 = vmatprep.subr.bf16.mxu0 %v825_v1  ;;  %486 = vmatprep.subr.bf16.mxu1 %v825_v1 }
  0x23   : > { %430 = vmatpush1.bf16.msra.mxu0 %v802_v10  ;;  %487 = vmatpush1.bf16.msra.mxu1 %v802_v10 }
  0x24   : > { %431 = vmatprep.subr.bf16.mxu0 %v825_v1  ;;  %488 = vmatprep.subr.bf16.mxu1 %v825_v1 }
  0x27   : > { %432 = vmatpush1.bf16.msra.mxu0 %v803_v11  ;;  %489 = vmatpush1.bf16.msra.mxu1 %v803_v11 }
  0x28   : > { %433 = vmatprep.subr.bf16.mxu0 %v825_v1  ;;  %490 = vmatprep.subr.bf16.mxu1 %v825_v1 }
  0x2b   : > { %434 = vmatpush1.bf16.msra.mxu0 %v413_v13  ;;  %491 = vmatpush1.bf16.msra.mxu1 %v413_v13 }
  0x2c   : > { %531 = vmatprep.subr.bf16.mxu0 %v825_v1  ;;  %588 = vmatprep.subr.bf16.mxu1 %v825_v1 }
  0x2e   : > { %448 = vmatmul.mubr.bf16.vlgmr.msra.gmra.mrb[0].mxu0 %v805_v14  ;;  %505 = vmatmul.mubr.bf16.vlgmr.msra.gmra.mrb[0].mxu1 %v808_v15 }
  0x2f   : > { %532 = vmatpush1.bf16.msra.mxu0 %v872_v0  ;;  %589 = vmatpush1.bf16.msra.mxu1 %v872_v0 }
  0x30   : > { %533 = vmatprep.subr.bf16.mxu0 %v825_v1  ;;  %590 = vmatprep.subr.bf16.mxu1 %v825_v1 }
  0x31   : > { %771 = vmatprep.mubr.msk.bf16.mxu0 %vm407_vm0, %v811_v16  ;;  %774 = vmatprep.mubr.msk.bf16.mxu1 %vm407_vm0, %v813_v17 }
  0x33   : > { %534 = vmatpush1.bf16.msra.mxu0 %v881_v2  ;;  %591 = vmatpush1.bf16.msra.mxu1 %v881_v2 }
  0x34   : > { %535 = vmatprep.subr.bf16.mxu0 %v825_v1  ;;  %592 = vmatprep.subr.bf16.mxu1 %v825_v1 }
  0x37   : > { %536 = vmatpush1.bf16.msra.mxu0 %v892_v3  ;;  %593 = vmatpush1.bf16.msra.mxu1 %v892_v3 }
  0x38   : > { %537 = vmatprep.subr.bf16.mxu0 %v825_v1  ;;  %594 = vmatprep.subr.bf16.mxu1 %v825_v1 }
  0x3b   : > { %538 = vmatpush1.bf16.msra.mxu0 %v912_v4  ;;  %595 = vmatpush1.bf16.msra.mxu1 %v912_v4 }
  0x3c   : > { %539 = vmatprep.subr.bf16.mxu0 %v825_v1  ;;  %596 = vmatprep.subr.bf16.mxu1 %v825_v1 }
  0x3f   : > { %540 = vmatpush1.bf16.msra.mxu0 %v799_v7  ;;  %597 = vmatpush1.bf16.msra.mxu1 %v799_v7 }
  0x40   : > { %541 = vmatprep.subr.bf16.mxu0 %v825_v1  ;;  %598 = vmatprep.subr.bf16.mxu1 %v825_v1 }
  0x43   : > { %542 = vmatpush1.bf16.msra.mxu0 %v800_v8  ;;  %599 = vmatpush1.bf16.msra.mxu1 %v800_v8 }
  0x44   : > { %543 = vmatprep.subr.bf16.mxu0 %v825_v1  ;;  %600 = vmatprep.subr.bf16.mxu1 %v825_v1 }
  0x47   : > { %544 = vmatpush1.bf16.msra.mxu0 %v801_v9  ;;  %601 = vmatpush1.bf16.msra.mxu1 %v801_v9 }
  0x48   : > { %545 = vmatprep.subr.bf16.mxu0 %v825_v1  ;;  %602 = vmatprep.subr.bf16.mxu1 %v825_v1 }
  0x4b   : > { %546 = vmatpush1.bf16.msra.mxu0 %v802_v10  ;;  %603 = vmatpush1.bf16.msra.mxu1 %v802_v10 }
  0x4c   : > { %547 = vmatprep.subr.bf16.mxu0 %v825_v1  ;;  %604 = vmatprep.subr.bf16.mxu1 %v825_v1 }
  0x4f   : > { %548 = vmatpush1.bf16.msra.mxu0 %v803_v11  ;;  %605 = vmatpush1.bf16.msra.mxu1 %v803_v11 }
  0x50   : > { %549 = vmatprep.subr.bf16.mxu0 %v825_v1  ;;  %606 = vmatprep.subr.bf16.mxu1 %v825_v1 }
  0x53   : > { %550 = vmatpush1.bf16.msra.mxu0 %v413_v13  ;;  %607 = vmatpush1.bf16.msra.mxu1 %v413_v13 }
  0x56   : > { %564 = vmatmul.mubr.bf16.vlgmr.msra.gmra.mrb[4].mxu0 %v815_v18  ;;  %621 = vmatmul.mubr.bf16.vlgmr.msra.gmra.mrb[4].mxu1 %v816_v19 }
 0x101   : > { %v449_v21 = vpop.f32.mrb[0].mxu0  ;;  %v506_v22 = vpop.f32.mrb[0].mxu1 }
 0x102   : > { %v450_v23 = vadd.f32 %v752_v20, %v449_v21  ;;  %v507_v24 = vadd.f32 %v752_v20, %v506_v22  ;;  %v451_v25 = vpop.f32.mrb[1].mxu0  ;;  %v508_v26 = vpop.f32.mrb[1].mxu1 }
 0x103   : > { %v452_v27 = vpop.f32.mrb[2].mxu0  ;;  %v509_v28 = vpop.f32.mrb[2].mxu1 }
 0x104   : > { %v456_v29 = vmax.f32 %v450_v23, 0.0  ;;  %v513_v30 = vmax.f32 %v507_v24, 0.0  ;;  %v453_v31 = vadd.f32 %v752_v20, %v452_v27  ;;  %v510_v32 = vadd.f32 %v752_v20, %v509_v28  ;;  %v454_v33 = vpop.f32.mrb[3].mxu0  ;;  %v511_v34 = vpop.f32.mrb[3].mxu1 }
 0x106   : > { %v515_v35 = vmax.f32 %v456_v29, %v513_v30  ;;  %v457_v36 = vmax.f32 %v453_v31, 0.0  ;;  %v514_v37 = vmax.f32 %v510_v32, 0.0 }
 0x108   : > { %v516_v38 = vmax.f32 %v457_v36, %v514_v37 }
 0x129   : > { %v565_v39 = vpop.f32.mrb[4].mxu0  ;;  %v622_v40 = vpop.f32.mrb[4].mxu1 }
 0x12a   : > { %v566_v41 = vadd.f32 %v752_v20, %v565_v39  ;;  %v623_v42 = vadd.f32 %v752_v20, %v622_v40  ;;  %v567_v43 = vpop.f32.mrb[5].mxu0  ;;  %v624_v44 = vpop.f32.mrb[5].mxu1 }
 0x12b   : > { %v568_v45 = vpop.f32.mrb[6].mxu0  ;;  %v625_v46 = vpop.f32.mrb[6].mxu1 }
 0x12c   : > { %v572_v47 = vmax.f32 %v566_v41, 0.0  ;;  %v629_v48 = vmax.f32 %v623_v42, 0.0  ;;  %v569_v49 = vadd.f32 %v752_v20, %v568_v45  ;;  %v626_v50 = vadd.f32 %v752_v20, %v625_v46  ;;  %v570_v51 = vpop.f32.mrb[7].mxu0  ;;  %v627_v52 = vpop.f32.mrb[7].mxu1 }
 0x12e   : > { %v631_v53 = vmax.f32 %v572_v47, %v629_v48  ;;  %v573_v54 = vmax.f32 %v569_v49, 0.0  ;;  %v630_v55 = vmax.f32 %v626_v50, 0.0 }
 0x130   : > { %v633_v56 = vmax.f32 %v515_v35, %v631_v53  ;;  %v632_v57 = vmax.f32 %v573_v54, %v630_v55 }
 0x132   : > { %v784_v58 = vpack.c.bf16 %v633_v56, %v633_v56  ;;  %v634_v59 = vmax.f32 %v516_v38, %v632_v57 }
 0x134   : > { %644 = vst.msk [vmem:[%s311_s15] sm:$0xf] %vm643_vm2, %v784_v58  ;;  %v785_v60 = vpack.c.bf16 %v634_v59, %v634_v59 }
 0x136   : > { %645 = vst.msk [vmem:[%s311_s15 + $0x4] sm:$0xf] %vm643_vm2, %v785_v60 }
 0x137 PF: > { %s16_s21 = sadd.s32 1, %s823_s21  }
 0x138   : > { %p13_p4 = scmp.ge.s32.totalorder %s16_s21, 4  }
 0x13a   :  { %15 = sbr.rel (!%p13_p4) target bundleno = 1 (0x1), region = 83 }

// kernel: simple_cnn_forward.5
= control target key start
LH: loop header
LB: loop body
LE: loop exit
PB: predicated region body
PF: predicated region fallthrough
CT: control target
= control target key end

     0   :  { %v631_v2 = vmov 0.0   ;;  %v80_v10 = vlaneseq  ;;  %v632_v14 = vmov 1966171168   ;;  %s805_s0 = inlined_call_operand.vmem [shape: bf16[2,256], index: 0, kind: input, shape index: {}]   ;;  %s806_s1 = inlined_call_operand.vmem [shape: bf16[256,120], index: 1, kind: input, shape index: {}]   ;;  %s807_s2 = inlined_call_operand.vmem [shape: f32[1,120], index: 2, kind: input, shape index: {}]   ;;  %s808_s3 = inlined_call_operand.vmem [shape: bf16[120,84], index: 3, kind: input, shape index: {}]   ;;  %s809_s4 = inlined_call_operand.vmem [shape: f32[1,84], index: 4, kind: input, shape index: {}]   ;;  %s810_s5 = inlined_call_operand.vmem [shape: bf16[84,10], index: 5, kind: input, shape index: {}]   ;;  %s811_s6 = inlined_call_operand.vmem [shape: f32[1,10], index: 6, kind: input, shape index: {}]   ;;  %s812_s7 = inlined_call_operand.hbm [shape: f32[2,10], index: 7, kind: output, shape index: {}]  }
   0x1   :  { %v577_v0 = vld [vmem:[%s806_s1 + $0x40] sm:$0xff]   ;;  %537 = vmatprep.subr.bf16.mxu1 %v631_v2  ;;  %v579_v3 = vld [vmem:[%s806_s1 + $0x48] sm:$0xff]   ;;  %v581_v5 = vld [vmem:[%s806_s1 + $0x50] sm:$0xff]   ;;  %v78_v15 = vunpack.c.l.s4 %v632_v14 }
   0x2   :  { %v578_v1 = vld [vmem:[%s806_s1] sm:$0xff]   ;;  %499 = vmatprep.subr.bf16.mxu0 %v577_v0  ;;  %v580_v4 = vld [vmem:[%s806_s1 + $0x8] sm:$0xff]   ;;  %v582_v6 = vld [vmem:[%s806_s1 + $0x10] sm:$0xff]   ;;  %v81_v16 = vshrl.u32 %v80_v10, 7 }
   0x3   :  { %500 = vmatpush3.bf16.msra.mxu0 %v578_v1  ;;  %v583_v7 = vld [vmem:[%s806_s1 + $0x58] sm:$0xff]   ;;  %v585_v9 = vld [vmem:[%s806_s1 + $0x60] sm:$0xff]   ;;  %v587_v12 = vld [vmem:[%s806_s1 + $0x68] sm:$0xff]   ;;  %v79_v20 = vunpack.c.0.s8 %v78_v15 }
   0x4   :  { %501 = vmatprep.subr.bf16.mxu0 %v579_v3  ;;  %v584_v8 = vld [vmem:[%s806_s1 + $0x18] sm:$0xff]   ;;  %v586_v11 = vld [vmem:[%s806_s1 + $0x20] sm:$0xff]   ;;  %v588_v18 = vld [vmem:[%s806_s1 + $0x28] sm:$0xff]  }
   0x5   :  { %v464_v13 = vld.sshfl [vmem:[%s805_s0] sm:$0x11 pattern:$0x75316420]  ;;  %v594_v21 = vld [vmem:[%s808_s3 + $0x8] sm:$0xff]   ;;  %v589_v22 = vld [vmem:[%s806_s1 + $0x70] sm:$0xff]   ;;  %v82_v24 = vsub.s32 %v79_v20, %v81_v16 }
   0x6   :  { %v593_v17 = vld [vmem:[%s808_s3] sm:$0xff]   ;;  %v76_v19 = vcombine.high %v464_v13, %v464_v13  ;;  %v590_v23 = vld [vmem:[%s806_s1 + $0x30] sm:$0xff]   ;;  %v591_v25 = vld [vmem:[%s806_s1 + $0x78] sm:$0xff]  }
   0x7   :  { %502 = vmatpush3.bf16.msra.mxu0 %v580_v4  ;;  %538 = vmatpush3.bf16.msra.mxu1 %v593_v17  ;;  %v595_v26 = vld [vmem:[%s808_s3 + $0x10] sm:$0xff]   ;;  %v592_v28 = vld [vmem:[%s806_s1 + $0x38] sm:$0xff]  }
   0x8   :  { %503 = vmatprep.subr.bf16.mxu0 %v581_v5  ;;  %539 = vmatprep.subr.bf16.mxu1 %v631_v2  ;;  %v90_v27 = vrot.slane %v76_v19, %v82_v24  ;;  %v596_v29 = vld [vmem:[%s808_s3 + $0x18] sm:$0xff]  }
   0xa   :  { %221 = vmatprep.mubr.bf16.mxu0 %v90_v27 }
   0xb   :  { %504 = vmatpush3.bf16.msra.mxu0 %v582_v6  ;;  %540 = vmatpush3.bf16.msra.mxu1 %v594_v21 }
   0xc   :  { %505 = vmatprep.subr.bf16.mxu0 %v583_v7  ;;  %541 = vmatprep.subr.bf16.mxu1 %v631_v2 }
   0xf   :  { %506 = vmatpush3.bf16.msra.mxu0 %v584_v8  ;;  %542 = vmatpush3.bf16.msra.mxu1 %v595_v26 }
  0x10   :  { %507 = vmatprep.subr.bf16.mxu0 %v585_v9 }
  0x13   :  { %508 = vmatpush3.bf16.msra.mxu0 %v586_v11 }
  0x14   :  { %509 = vmatprep.subr.bf16.mxu0 %v587_v12 }
  0x17   :  { %510 = vmatpush3.bf16.msra.mxu0 %v588_v18 }
  0x18   :  { %511 = vmatprep.subr.bf16.mxu0 %v589_v22 }
  0x1b   :  { %512 = vmatpush3.bf16.msra.mxu0 %v590_v23 }
  0x1c   :  { %12 = vsyncpa [#allocation3], 0  ;;  %513 = vmatprep.subr.bf16.mxu0 %v591_v25  ;;  %543 = vmatprep.subr.bf16.mxu1 %v631_v2  ;;  %v83_v30 = vrot.slane %v464_v13, %v82_v24  ;;  %v597_v31 = vld [vmem:[%s808_s3 + $0x20] sm:$0xff]   ;;  %v598_v32 = vld [vmem:[%s808_s3 + $0x28] sm:$0xff]   ;;  %vm302_vm0 = vcmask 1043456   ;;  %vm633_vm1 = vmmov 0  }
  0x1d   :  { %544 = vmatpush3.bf16.msra.mxu1 %v596_v29  ;;  %v599_v33 = vld [vmem:[%s808_s3 + $0x30] sm:$0xff]   ;;  %v600_v34 = vld [vmem:[%s808_s3 + $0x38] ss:$0 sps:$4 sm:$0xff]   ;;  %553 = vmatprep.mubr.msk.bf16.mxu1 %vm633_vm1, %v631_v2  ;;  %v601_v36 = vld [vmem:[%s810_s5] sm:$0xff]   ;;  %vm298_vm2 = vcmask 982016   ;;  %vm403_vm3 = vcmask 1041408  }
  0x1e   :  { %545 = vmatprep.subr.bf16.mxu1 %v631_v2  ;;  %v304_v35 = vsel %vm302_vm0, %v600_v34, 0  ;;  %v602_v37 = vld [vmem:[%s810_s5 + $0x8] sm:$0xff]   ;;  %v603_v38 = vld [vmem:[%s810_s5 + $0x10] sm:$0xff]   ;;  %v604_v39 = vld [vmem:[%s810_s5 + $0x18] sm:$0xff]   ;;  %vm399_vm4 = vcmask 687104   ;;  %vm447_vm5 = vcmask 74752  }
  0x1f   :  { %514 = vmatpush3.bf16.msra.mxu0 %v592_v28  ;;  %v463_v41 = vld [vmem:[%s807_s2] ss:$0 sm:$0xff]  ;;  %v606_v50 = vld [vmem:[%s810_s5 + $0x28] ss:$0 sps:$4 sm:$0x33]  }
  0x20   :  { %557 = vmatprep.subr.bf16.mxu0 %v631_v2  ;;  %v605_v49 = vld [vmem:[%s810_s5 + $0x20] sm:$0xff]   ;;  %v405_v51 = vsel %vm403_vm3, %v606_v50, 0  ;;  %s634_s5 = smov [#allocation2]  }
  0x21   :  { %546 = vmatpush3.bf16.msra.mxu1 %v597_v31  ;;  %v481_v52 = vld [vmem:[%s809_s4] ss:$0 sm:$0xff]  ;;  %s455_s18 = sshll.u32 %s634_s5, 4  ;;  %s456_s18 = int_to_ptr.vmem [resolvable:$true] %s455_s18 }
  0x22   :  { %222 = vmatmul.mubr.bf16.vlgmr.msra.gmra.mrb[0].mxu0 %v83_v30  ;;  %547 = vmatprep.subr.bf16.mxu1 %v631_v2  ;;  %v491_v60 = vld [vmem:[%s811_s6] ss:$0 sm:$0xff]  ;;  %s607_s4 = scalar_lea.vmem %s456_s18, 32  ;;  %p612_p1 = scmp.lt.s32.totalorder %s456_s18, %s456_s18 }
  0x23   :  { %569 = vmatprep.mubr.msk.bf16.mxu0 %vm633_vm1, %v631_v2  ;;  %558 = vmatpush3.bf16.msra.mxu0 %v601_v36  ;;  %p608_p0 = scmp.ne.s32.totalorder %s456_s18, %s607_s4  ;;  %p613_p2 = scmp.lt.s32.totalorder %s607_s4, %s607_s4 }
  0x24   :  { %559 = vmatprep.subr.bf16.mxu0 %v631_v2 }
  0x25   :  { %548 = vmatpush3.bf16.msra.mxu1 %v598_v32  ;;  %p614_p3 = por %p613_p2, %p612_p1 }
  0x26   :  { %549 = vmatprep.subr.bf16.mxu1 %v631_v2 }
  0x27   :  { %560 = vmatpush3.bf16.msra.mxu0 %v602_v37  ;;  %p615_p4 = pnand %p614_p3, %p608_p0 }
  0x28   :  { %561 = vmatprep.subr.bf16.mxu0 %v631_v2 }
  0x29   :  { %550 = vmatpush3.bf16.msra.mxu1 %v599_v33 }
  0x2a   :  { %551 = vmatprep.subr.bf16.mxu1 %v631_v2 }
  0x2b   :  { %562 = vmatpush3.bf16.msra.mxu0 %v603_v38 }
  0x2c   :  { %563 = vmatprep.subr.bf16.mxu0 %v631_v2 }
  0x2d   :  { %552 = vmatpush3.bf16.msra.mxu1 %v304_v35 }
  0x2f   :  { %564 = vmatpush3.bf16.msra.mxu0 %v604_v39 }
  0x30   :  { %565 = vmatprep.subr.bf16.mxu0 %v631_v2 }
  0x33   :  { %566 = vmatpush3.bf16.msra.mxu0 %v605_v49 }
  0x34   :  { %567 = vmatprep.subr.bf16.mxu0 %v631_v2 }
  0x37   :  { %568 = vmatpush3.bf16.msra.mxu0 %v405_v51 }
  0xf5   :  { %v515_v40 = vpop.f32.mrb[0].mxu0 }
  0xf6   :  { %v516_v42 = vpop.f32.mrb[1].mxu0 }
  0xf7   :  { %v517_v43 = vadd.f32 %v516_v42, %v515_v40  ;;  %v518_v44 = vpop.f32.mrb[2].mxu0 }
  0xf8   :  { %v519_v45 = vpop.f32.mrb[3].mxu0 }
  0xf9   :  { %v224_v46 = vadd.f32 %v517_v43, %v463_v41 }
  0xfb   :  { %v229_v47 = vmax.f32 %v224_v46, 0.0 }
  0xfd   :  { %v230_v48 = vpack.c.bf16 %v229_v47, %v229_v47 }
  0xff   :  { %554 = vmatmul.mubr.msk.bf16.vlgmr.msra.gmra.mrb[0].mxu1 %vm298_vm2, %v230_v48 }
 0x1d2   :  { %v340_v53 = vpop.f32.mrb[0].mxu1 }
 0x1d3   :  { %v341_v54 = vadd.f32 %v481_v52, %v340_v53  ;;  %v555_v55 = vpop.f32.mrb[1].mxu1 }
 0x1d4   :  { %v343_v56 = vpop.f32.mrb[2].mxu1 }
 0x1d5   :  { %v346_v57 = vmax.f32 %v341_v54, 0.0  ;;  %v556_v58 = vpop.f32.mrb[3].mxu1 }
 0x1d7   :  { %v347_v59 = vpack.c.bf16 %v346_v57, %v346_v57 }
 0x1d9   :  { %570 = vmatmul.mubr.msk.bf16.vlgmr.msra.gmra.mrb[4].mxu0 %vm399_vm4, %v347_v59 }
 0x2ac   :  { %v441_v61 = vpop.f32.mrb[4].mxu0 }
 0x2ad   :  { %v442_v62 = vadd.f32 %v491_v60, %v441_v61  ;;  %v571_v63 = vpop.f32.mrb[5].mxu0 }
 0x2ae   :  { %v444_v0 = vpop.f32.mrb[6].mxu0 }
 0x2af   :  { %v572_v1 = vpop.f32.mrb[7].mxu0  ;;  %448 = vst.msk [vmem:[#allocation2] sm:$0x3] %vm447_vm5, %v442_v62 }
 0x2b0   :  { %618 = shalt.err (!%p615_p4)
}
 0x2b1   :  { %s619_s6 = scalar_lea.hbm %s812_s7, 32 }
 0x2b2   :  { %p620_p5 = scmp.ne.s32.totalorder %s812_s7, %s619_s6  ;;  %p623_p6 = scmp.lt.u32.totalorder %s619_s6, %s812_s7 }
 0x2b4   :  { %p625_p7 = pnand %p623_p6, %p620_p5 }
 0x2b6   :  { %628 = shalt.err (!%p625_p7)
}
 0x2b7   :  { %458 = dma.vmem_to_hbm [thread:$0]  %s456_s18, 32, %s812_s7, [#allocation3]  }
 0x2b8   :  { %629 = dma.done.wait [#allocation3], 32  }
 0x2b9   :  { %630 = vsyncadd [#allocation3], 4294967264 }
 0x2ba   :  { %462 = vsyncpa [#allocation3], 1 }

</bundles_post_ra>
